<compile_context>
chip_gen: v7x
topology: tpu7x:2x2x1
jax: 0.10.0
libtpu: 0.0.40
codegen_flags: <defaults>
</compile_context>

<pallas_src>
import jax
import jax.numpy as jnp
import numpy as np
from jax.experimental import pallas as pl
from jax.experimental.pallas import tpu as pltpu


def _relevance_kernel(emb_ref, w1_ref, b1_ref, g_ref, beta_ref, w2_ref, b2_ref,
                      rw_ref, cond_ref, m_ref, l_ref, cond_acc_ref):
    i = pl.program_id(0)
    nb = pl.num_programs(0)
    tn = emb_ref.shape[0]
    B, E = cond_ref.shape

    @pl.when(i == 0)
    def _init():
        m_ref[...] = jnp.full((1, 1), -jnp.inf, jnp.float32)
        l_ref[...] = jnp.zeros((1, 1), jnp.float32)
        cond_acc_ref[...] = jnp.zeros((1, E), jnp.float32)

    emb = emb_ref[...]                                    # (tn, E)  f32 or bf16

    # Linear(E -> H) on the MXU with f32 accumulation.
    h = jnp.dot(emb, w1_ref[...], preferred_element_type=jnp.float32) + b1_ref[...]

    # LayerNorm over H (lane axis): biased variance, eps=1e-5 (PyTorch default).
    mean = jnp.mean(h, axis=-1, keepdims=True)
    var = jnp.mean((h - mean) ** 2, axis=-1, keepdims=True)
    h = (h - mean) * jax.lax.rsqrt(var + 1e-5)
    h = h * g_ref[...] + beta_ref[...]

    # ReLU; Dropout = identity (eval semantics).
    h = jnp.maximum(h, 0.0)

    # Linear(H -> 1) as VPU multiply + lane reduce; b2 is an SMEM scalar.
    s_col = jnp.sum(h * w2_ref[...], axis=-1, keepdims=True) + b2_ref[0, 0]  # (tn,1)

    # Lane-dense copy of this block's raw scores (nodes -> lanes), stashed in
    # the resident weights output buffer; normalized at the last grid step.
    rows = jax.lax.broadcasted_iota(jnp.int32, (tn, tn), 0)
    cols = jax.lax.broadcasted_iota(jnp.int32, (tn, tn), 1)
    s_mat = jnp.broadcast_to(s_col, (tn, tn))
    s_row = jnp.sum(jnp.where(rows == cols, s_mat, 0.0),
                    axis=0, keepdims=True)                # (1, tn)
    rw_ref[i] = s_row

    # Online softmax statistics + unnormalized condition accumulator.
    m_old = m_ref[...]                                               # (1,1)
    m_new = jnp.maximum(m_old, jnp.max(s_row, axis=-1, keepdims=True))
    alpha = jnp.exp(m_old - m_new)                                   # (1,1)
    p = jnp.exp(s_col - m_new)                                       # (tn,1)
    l_ref[...] = l_ref[...] * alpha + jnp.sum(p, axis=0, keepdims=True)
    cond_acc_ref[...] = (cond_acc_ref[...] * alpha
                         + jnp.sum(p * emb.astype(jnp.float32),
                                   axis=0, keepdims=True))           # (1,E)
    m_ref[...] = m_new

    @pl.when(i == nb - 1)
    def _finalize():
        # exact division keeps the f32 reference check tight
        # (pl.reciprocal(..., approx=True) is fine when ~1e-4 rel error is OK).
        inv_l = 1.0 / l_ref[...]                                     # (1,1)
        rw_ref[...] = jnp.exp(rw_ref[...] - m_ref[...]) * inv_l      # (nb,1,tn)
        cond_ref[...] = jnp.broadcast_to(cond_acc_ref[...] * inv_l, (B, E))


def relevance_forward(node_emb, w1, b1, gamma, beta, w2, b2, *, batch,
                      block_n=128, use_bf16_matmul=False):
    """relevance_scorer + softmax(dim=0) + condition, fused in one pallas_call.

    Returns (relevance_weights (N,) f32, condition (batch, E) f32).
    """
    N, E = node_emb.shape
    H = w1.shape[1]
    tn = block_n if (N >= block_n and N % block_n == 0) else N
    nb = N // tn
    assert nb * tn == N, "N must be a multiple of the node block size"

    w2_row = w2.reshape(1, H)   # (H,1) -> (1,H): lane-aligned for the VPU reduce
    if use_bf16_matmul:
        # bf16 feed for the MXU / halved HBM traffic of the (N,E) stream.
        # All elementwise math inside the kernel stays f32 (v5e-safe).
        node_emb = node_emb.astype(jnp.bfloat16)
        w1 = w1.astype(jnp.bfloat16)

    grid_spec = pltpu.PrefetchScalarGridSpec(
        num_scalar_prefetch=0,
        grid=(nb,),
        in_specs=[
            pl.BlockSpec((tn, E), lambda i: (i, 0)),          # node embeddings (streamed)
            pl.BlockSpec((E, H), lambda i: (0, 0)),           # W1 (fetched once)
            pl.BlockSpec((1, H), lambda i: (0, 0)),           # b1
            pl.BlockSpec((1, H), lambda i: (0, 0)),           # LN gamma
            pl.BlockSpec((1, H), lambda i: (0, 0)),           # LN beta
            pl.BlockSpec((1, H), lambda i: (0, 0)),           # W2 as a (1,H) row
            pl.BlockSpec(memory_space=pltpu.MemorySpace.SMEM),  # b2 scalar
        ],
        out_specs=(
            pl.BlockSpec((nb, 1, tn), lambda i: (0, 0, 0)),   # weights (lane-dense, resident)
            pl.BlockSpec((batch, E), lambda i: (0, 0)),       # condition (resident)
        ),
        scratch_shapes=[
            pltpu.VMEM((1, 1), jnp.float32),                  # running max
            pltpu.VMEM((1, 1), jnp.float32),                  # running sum-exp
            pltpu.VMEM((1, E), jnp.float32),                  # unnormalized condition acc
        ],
    )

    rw3, cond = pl.pallas_call(
        _relevance_kernel,
        grid_spec=grid_spec,
        out_shape=(
            jax.ShapeDtypeStruct((nb, 1, tn), jnp.float32),
            jax.ShapeDtypeStruct((batch, E), jnp.float32),
        ),
        compiler_params=pltpu.CompilerParams(
            # The single grid axis is the softmax/condition reduction over nodes,
            # so it must stay "arbitrary" (a parallel pre-pass per TC on v7x would
            # need a split max/sum combine step).
            dimension_semantics=("arbitrary",),
        ),
    )(node_emb, w1, b1, gamma, beta, w2_row, b2)

    return rw3.reshape(N), cond   # reshape is a cheap row-major relabeling


def citation_paper_generator_forward(node_embeddings, paper_features,
                                     w1, b1, gamma, beta, w2, b2,
                                     use_bf16_matmul=False):
    """Mirrors CitationPaperGenerator.forward for 2D paper_features."""
    B = paper_features.shape[0]
    relevance_weights, condition = relevance_forward(
        node_embeddings, w1, b1, gamma, beta, w2, b2,
        batch=B, use_bf16_matmul=use_bf16_matmul)

    # TODO(synk): self.generator(paper_features, condition) — the source module
    # only provides placeholder Hierarchical/CVAE classes with no forward();
    # not translatable. The 3-D paper_features path is likewise omitted.
    return {"condition": condition, "relevance_weights": relevance_weights}


if __name__ == "__main__":
    # Small shapes implied by the module (num_nodes N, embedding_dim E,
    # hidden_dim H, feature_dim F, batch B). N is a multiple of the 128-row
    # node block so the online-softmax grid is actually exercised (2 steps).
    N, E, H, F, B = 256, 64, 128, 32, 2

    key = jax.random.PRNGKey(0)
    ks = jax.random.split(key, 6)
    node_embeddings = jax.random.normal(ks[0], (N, E), dtype=jnp.float32)
    paper_features = jax.random.normal(ks[1], (B, F), dtype=jnp.float32)

    # relevance_scorer params: Linear(E,H), LayerNorm(H), ReLU, Dropout, Linear(H,1)
    w1 = jax.random.uniform(ks[2], (E, H), jnp.float32, -1.0, 1.0) / jnp.sqrt(E)
    b1 = jax.random.uniform(ks[3], (1, H), jnp.float32, -1.0, 1.0) / jnp.sqrt(E)
    gamma = jnp.ones((1, H), jnp.float32)
    beta = jnp.zeros((1, H), jnp.float32)
    w2 = jax.random.uniform(ks[4], (H, 1), jnp.float32, -1.0, 1.0) / jnp.sqrt(H)
    b2 = jax.random.uniform(ks[5], (1, 1), jnp.float32, -1.0, 1.0) / jnp.sqrt(H)

    outputs = citation_paper_generator_forward(
        node_embeddings, paper_features, w1, b1, gamma, beta, w2, b2)
    jax.block_until_ready(outputs)

    # Pure-JAX reference
    h_ref = node_embeddings @ w1 + b1
    mu = h_ref.mean(-1, keepdims=True)
    var = ((h_ref - mu) ** 2).mean(-1, keepdims=True)
    h_ref = (h_ref - mu) / jnp.sqrt(var + 1e-5) * gamma + beta
    h_ref = jnp.maximum(h_ref, 0.0)
    s_ref = (h_ref @ w2 + b2)[:, 0]
    w_ref = jax.nn.softmax(s_ref, axis=0)
    cond_row = w_ref[None, :] @ node_embeddings
    cond_ref = jnp.broadcast_to(cond_row, (B, E))

    assert np.allclose(np.asarray(outputs["relevance_weights"]),
                       np.asarray(w_ref), atol=5e-5)
    assert np.allclose(np.asarray(outputs["condition"]),
                       np.asarray(cond_ref), atol=5e-5)

    # bf16-MXU variant (v6e/v7x HBM-traffic optimization); looser tolerance.
    outputs_bf16 = citation_paper_generator_forward(
        node_embeddings, paper_features, w1, b1, gamma, beta, w2, b2,
        use_bf16_matmul=True)
    jax.block_until_ready(outputs_bf16)
    assert np.allclose(np.asarray(outputs_bf16["relevance_weights"]),
                       np.asarray(w_ref), atol=2e-2)
    assert np.allclose(np.asarray(outputs_bf16["condition"]),
                       np.asarray(cond_ref), atol=2e-2)

    print("KERNEL_OK")
</pallas_src>

<mosaic_0001>
module attributes {stable_mosaic.version = 11 : i64} {
  func.func @_relevance_kernel(%arg0: i32, %arg1: memref<128x64xf32, #tpu.memory_space<vmem>>, %arg2: memref<64x128xf32, #tpu.memory_space<vmem>>, %arg3: memref<1x128xf32, #tpu.memory_space<vmem>>, %arg4: memref<1x128xf32, #tpu.memory_space<vmem>>, %arg5: memref<1x128xf32, #tpu.memory_space<vmem>>, %arg6: memref<1x128xf32, #tpu.memory_space<vmem>>, %arg7: memref<1x1xf32, #tpu.memory_space<smem>>, %arg8: memref<2x1x128xf32, #tpu.memory_space<vmem>>, %arg9: memref<2x64xf32, #tpu.memory_space<vmem>>, %arg10: memref<1x1xf32, #tpu.memory_space<vmem>>, %arg11: memref<1x1xf32, #tpu.memory_space<vmem>>, %arg12: memref<1x64xf32, #tpu.memory_space<vmem>>) attributes {dimension_semantics = [#tpu.dimension_semantics<arbitrary>], iteration_bounds = array<i64: 2>, scalar_prefetch = 0 : i64, scratch_operands = 3 : i64, tpu.core_type = #tpu.core_type<tc>, window_params = [{transform_indices = @transform_0, window_bounds = array<i64: 128, 64>}, {pipeline_mode = #tpu.pipeline_mode<synchronous>, transform_indices = @transform_1, window_bounds = array<i64: 64, 128>}, {pipeline_mode = #tpu.pipeline_mode<synchronous>, transform_indices = @transform_2, window_bounds = array<i64: 1, 128>}, {pipeline_mode = #tpu.pipeline_mode<synchronous>, transform_indices = @transform_3, window_bounds = array<i64: 1, 128>}, {pipeline_mode = #tpu.pipeline_mode<synchronous>, transform_indices = @transform_4, window_bounds = array<i64: 1, 128>}, {pipeline_mode = #tpu.pipeline_mode<synchronous>, transform_indices = @transform_5, window_bounds = array<i64: 1, 128>}, {transform_indices = @transform_6, window_bounds = array<i64: 1, 1>}, {pipeline_mode = #tpu.pipeline_mode<synchronous>, transform_indices = @transform_7, window_bounds = array<i64: 2, 1, 128>}, {pipeline_mode = #tpu.pipeline_mode<synchronous>, transform_indices = @transform_8, window_bounds = array<i64: 2, 64>}]} {
    %c0_i32 = arith.constant 0 : i32
    %0 = arith.cmpi eq, %arg0, %c0_i32 : i32
    %1 = arith.extui %0 : i1 to i32
    %c0_i32_0 = arith.constant 0 : i32
    %2 = arith.cmpi ne, %1, %c0_i32_0 : i32
    scf.if %2 {
      %cst_41 = arith.constant 0xFF800000 : f32
      %84 = vector.broadcast %cst_41 : f32 to vector<1x1xf32>
      %c0_42 = arith.constant 0 : index
      %c0_43 = arith.constant 0 : index
      %85 = vector.load %arg10[%c0_42, %c0_43] : memref<1x1xf32, #tpu.memory_space<vmem>>, vector<1x1xf32>
      tpu.vector_store %arg10[%c0_42, %c0_43], %84 {strides = array<i32>} : memref<1x1xf32, #tpu.memory_space<vmem>>, vector<1x1xf32>,
      %cst_44 = arith.constant 0.000000e+00 : f32
      %86 = vector.broadcast %cst_44 : f32 to vector<1x1xf32>
      %c0_45 = arith.constant 0 : index
      %c0_46 = arith.constant 0 : index
      %87 = vector.load %arg11[%c0_45, %c0_46] : memref<1x1xf32, #tpu.memory_space<vmem>>, vector<1x1xf32>
      tpu.vector_store %arg11[%c0_45, %c0_46], %86 {strides = array<i32>} : memref<1x1xf32, #tpu.memory_space<vmem>>, vector<1x1xf32>,
      %cst_47 = arith.constant 0.000000e+00 : f32
      %88 = vector.broadcast %cst_47 : f32 to vector<1x64xf32>
      %c0_48 = arith.constant 0 : index
      %c0_49 = arith.constant 0 : index
      %89 = vector.load %arg12[%c0_48, %c0_49] : memref<1x64xf32, #tpu.memory_space<vmem>>, vector<1x64xf32>
      tpu.vector_store %arg12[%c0_48, %c0_49], %88 {strides = array<i32>} : memref<1x64xf32, #tpu.memory_space<vmem>>, vector<1x64xf32>,
    } else {
    }
    %c0 = arith.constant 0 : index
    %c0_1 = arith.constant 0 : index
    %3 = vector.load %arg1[%c0, %c0_1] : memref<128x64xf32, #tpu.memory_space<vmem>>, vector<128x64xf32>
    %c0_2 = arith.constant 0 : index
    %c0_3 = arith.constant 0 : index
    %4 = vector.load %arg2[%c0_2, %c0_3] : memref<64x128xf32, #tpu.memory_space<vmem>>, vector<64x128xf32>
    %cst = arith.constant dense<0.000000e+00> : vector<128x128xf32>
    %5 = tpu.matmul %3, %4, %cst {dimension_numbers = #tpu.dot_dimension_numbers<[1], [0], [0], [1], [0, 0, 1, 1], [], []>} : vector<128x64xf32>, vector<64x128xf32>, vector<128x128xf32> -> vector<128x128xf32>
    %c0_4 = arith.constant 0 : index
    %c0_5 = arith.constant 0 : index
    %6 = vector.load %arg3[%c0_4, %c0_5] : memref<1x128xf32, #tpu.memory_space<vmem>>, vector<1x128xf32>
    %7 = vector.broadcast %6 : vector<1x128xf32> to vector<128x128xf32>
    %8 = arith.addf %5, %7 : vector<128x128xf32>
    %cst_6 = arith.constant dense<0.000000e+00> : vector<128xf32>
    %9 = vector.multi_reduction <add>, %8, %cst_6 [1] : vector<128x128xf32> to vector<128xf32>
    %10 = vector.shape_cast %9 : vector<128xf32> to vector<128x1xf32>
    %cst_7 = arith.constant 1.280000e+02 : f32
    %11 = vector.broadcast %cst_7 : f32 to vector<128x1xf32>
    %12 = arith.divf %10, %11 : vector<128x1xf32>
    %13 = vector.broadcast %12 : vector<128x1xf32> to vector<128x128xf32>
    %14 = arith.subf %8, %13 : vector<128x128xf32>
    %15 = arith.mulf %14, %14 : vector<128x128xf32>
    %cst_8 = arith.constant dense<0.000000e+00> : vector<128xf32>
    %16 = vector.multi_reduction <add>, %15, %cst_8 [1] : vector<128x128xf32> to vector<128xf32>
    %17 = vector.shape_cast %16 : vector<128xf32> to vector<128x1xf32>
    %cst_9 = arith.constant 1.280000e+02 : f32
    %18 = vector.broadcast %cst_9 : f32 to vector<128x1xf32>
    %19 = arith.divf %17, %18 : vector<128x1xf32>
    %20 = vector.broadcast %12 : vector<128x1xf32> to vector<128x128xf32>
    %21 = arith.subf %8, %20 : vector<128x128xf32>
    %cst_10 = arith.constant 9.99999974E-6 : f32
    %22 = vector.broadcast %cst_10 : f32 to vector<128x1xf32>
    %23 = arith.addf %19, %22 : vector<128x1xf32>
    %24 = math.rsqrt %23 : vector<128x1xf32>
    %25 = vector.broadcast %24 : vector<128x1xf32> to vector<128x128xf32>
    %26 = arith.mulf %21, %25 : vector<128x128xf32>
    %c0_11 = arith.constant 0 : index
    %c0_12 = arith.constant 0 : index
    %27 = vector.load %arg4[%c0_11, %c0_12] : memref<1x128xf32, #tpu.memory_space<vmem>>, vector<1x128xf32>
    %28 = vector.broadcast %27 : vector<1x128xf32> to vector<128x128xf32>
    %29 = arith.mulf %26, %28 : vector<128x128xf32>
    %c0_13 = arith.constant 0 : index
    %c0_14 = arith.constant 0 : index
    %30 = vector.load %arg5[%c0_13, %c0_14] : memref<1x128xf32, #tpu.memory_space<vmem>>, vector<1x128xf32>
    %31 = vector.broadcast %30 : vector<1x128xf32> to vector<128x128xf32>
    %32 = arith.addf %29, %31 : vector<128x128xf32>
    %cst_15 = arith.constant 0.000000e+00 : f32
    %33 = vector.broadcast %cst_15 : f32 to vector<128x128xf32>
    %34 = arith.maximumf %32, %33 : vector<128x128xf32>
    %c0_16 = arith.constant 0 : index
    %c0_17 = arith.constant 0 : index
    %35 = vector.load %arg6[%c0_16, %c0_17] : memref<1x128xf32, #tpu.memory_space<vmem>>, vector<1x128xf32>
    %36 = vector.broadcast %35 : vector<1x128xf32> to vector<128x128xf32>
    %37 = arith.mulf %34, %36 : vector<128x128xf32>
    %cst_18 = arith.constant dense<0.000000e+00> : vector<128xf32>
    %38 = vector.multi_reduction <add>, %37, %cst_18 [1] : vector<128x128xf32> to vector<128xf32>
    %39 = vector.shape_cast %38 : vector<128xf32> to vector<128x1xf32>
    %c0_19 = arith.constant 0 : index
    %c0_20 = arith.constant 0 : index
    %40 = memref.load %arg7[%c0_19, %c0_20] : memref<1x1xf32, #tpu.memory_space<smem>>
    %41 = vector.broadcast %40 : f32 to vector<128x1xf32>
    %42 = arith.addf %39, %41 : vector<128x1xf32>
    %43 = tpu.iota {dimensions = array<i32: 0>} : vector<128x128xi32>
    %44 = tpu.iota {dimensions = array<i32: 1>} : vector<128x128xi32>
    %45 = vector.shape_cast %42 : vector<128x1xf32> to vector<128x1xf32>
    %46 = vector.broadcast %45 : vector<128x1xf32> to vector<128x128xf32>
    %47 = arith.cmpi eq, %43, %44 : vector<128x128xi32>
    %cst_21 = arith.constant 0.000000e+00 : f32
    %48 = vector.broadcast %cst_21 : f32 to vector<128x128xf32>
    %49 = arith.select %47, %46, %48 : vector<128x128xi1>, vector<128x128xf32>
    %cst_22 = arith.constant dense<0.000000e+00> : vector<128xf32>
    %50 = vector.multi_reduction <add>, %49, %cst_22 [0] : vector<128x128xf32> to vector<128xf32>
    %51 = vector.shape_cast %50 : vector<128xf32> to vector<1x128xf32>
    %52 = arith.index_cast %arg0 : i32 to index
    %c0_23 = arith.constant 0 : index
    %c0_24 = arith.constant 0 : index
    %53 = vector.load %arg8[%52, %c0_23, %c0_24] : memref<2x1x128xf32, #tpu.memory_space<vmem>>, vector<1x1x128xf32>
    %54 = vector.shape_cast %53 : vector<1x1x128xf32> to vector<1x128xf32>
    %55 = vector.shape_cast %51 : vector<1x128xf32> to vector<1x1x128xf32>
    tpu.vector_store %arg8[%52, %c0_23, %c0_24], %55 {strides = array<i32>} : memref<2x1x128xf32, #tpu.memory_space<vmem>>, vector<1x1x128xf32>,
    %c0_25 = arith.constant 0 : index
    %c0_26 = arith.constant 0 : index
    %56 = vector.load %arg10[%c0_25, %c0_26] : memref<1x1xf32, #tpu.memory_space<vmem>>, vector<1x1xf32>
    %cst_27 = arith.constant dense<0xFF800000> : vector<1xf32>
    %57 = vector.multi_reduction <maximumf>, %51, %cst_27 [1] : vector<1x128xf32> to vector<1xf32>
    %58 = vector.shape_cast %57 : vector<1xf32> to vector<1x1xf32>
    %59 = arith.maximumf %56, %58 : vector<1x1xf32>
    %60 = arith.subf %56, %59 : vector<1x1xf32>
    %61 = math.exp %60 : vector<1x1xf32>
    %62 = vector.broadcast %59 : vector<1x1xf32> to vector<128x1xf32>
    %63 = arith.subf %42, %62 : vector<128x1xf32>
    %64 = math.exp %63 : vector<128x1xf32>
    %c0_28 = arith.constant 0 : index
    %c0_29 = arith.constant 0 : index
    %65 = vector.load %arg11[%c0_28, %c0_29] : memref<1x1xf32, #tpu.memory_space<vmem>>, vector<1x1xf32>
    %66 = arith.mulf %65, %61 : vector<1x1xf32>
    %cst_30 = arith.constant dense<0.000000e+00> : vector<1xf32>
    %67 = vector.multi_reduction <add>, %64, %cst_30 [0] : vector<128x1xf32> to vector<1xf32>
    %68 = vector.shape_cast %67 : vector<1xf32> to vector<1x1xf32>
    %69 = arith.addf %66, %68 : vector<1x1xf32>
    %c0_31 = arith.constant 0 : index
    %c0_32 = arith.constant 0 : index
    %70 = vector.load %arg11[%c0_31, %c0_32] : memref<1x1xf32, #tpu.memory_space<vmem>>, vector<1x1xf32>
    tpu.vector_store %arg11[%c0_31, %c0_32], %69 {strides = array<i32>} : memref<1x1xf32, #tpu.memory_space<vmem>>, vector<1x1xf32>,
    %c0_33 = arith.constant 0 : index
    %c0_34 = arith.constant 0 : index
    %71 = vector.load %arg12[%c0_33, %c0_34] : memref<1x64xf32, #tpu.memory_space<vmem>>, vector<1x64xf32>
    %72 = vector.broadcast %61 : vector<1x1xf32> to vector<1x64xf32>
    %73 = arith.mulf %71, %72 : vector<1x64xf32>
    %74 = vector.broadcast %64 : vector<128x1xf32> to vector<128x64xf32>
    %75 = arith.mulf %74, %3 : vector<128x64xf32>
    %cst_35 = arith.constant dense<0.000000e+00> : vector<64xf32>
    %76 = vector.multi_reduction <add>, %75, %cst_35 [0] : vector<128x64xf32> to vector<64xf32>
    %77 = vector.shape_cast %76 : vector<64xf32> to vector<1x64xf32>
    %78 = arith.addf %73, %77 : vector<1x64xf32>
    %c0_36 = arith.constant 0 : index
    %c0_37 = arith.constant 0 : index
    %79 = vector.load %arg12[%c0_36, %c0_37] : memref<1x64xf32, #tpu.memory_space<vmem>>, vector<1x64xf32>
    tpu.vector_store %arg12[%c0_36, %c0_37], %78 {strides = array<i32>} : memref<1x64xf32, #tpu.memory_space<vmem>>, vector<1x64xf32>,
    %c0_38 = arith.constant 0 : index
    %c0_39 = arith.constant 0 : index
    %80 = vector.load %arg10[%c0_38, %c0_39] : memref<1x1xf32, #tpu.memory_space<vmem>>, vector<1x1xf32>
    tpu.vector_store %arg10[%c0_38, %c0_39], %59 {strides = array<i32>} : memref<1x1xf32, #tpu.memory_space<vmem>>, vector<1x1xf32>,
    %c1_i32 = arith.constant 1 : i32
    %81 = arith.cmpi eq, %arg0, %c1_i32 : i32
    %82 = arith.extui %81 : i1 to i32
    %c0_i32_40 = arith.constant 0 : i32
    %83 = arith.cmpi ne, %82, %c0_i32_40 : i32
    scf.if %83 {
      %c0_41 = arith.constant 0 : index
      %c0_42 = arith.constant 0 : index
      %84 = vector.load %arg11[%c0_41, %c0_42] : memref<1x1xf32, #tpu.memory_space<vmem>>, vector<1x1xf32>
      %cst_43 = arith.constant 1.000000e+00 : f32
      %85 = vector.broadcast %cst_43 : f32 to vector<1x1xf32>
      %86 = arith.divf %85, %84 : vector<1x1xf32>
      %c0_44 = arith.constant 0 : index
      %c0_45 = arith.constant 0 : index
      %c0_46 = arith.constant 0 : index
      %87 = vector.load %arg8[%c0_44, %c0_45, %c0_46] : memref<2x1x128xf32, #tpu.memory_space<vmem>>, vector<2x1x128xf32>
      %c0_47 = arith.constant 0 : index
      %c0_48 = arith.constant 0 : index
      %88 = vector.load %arg10[%c0_47, %c0_48] : memref<1x1xf32, #tpu.memory_space<vmem>>, vector<1x1xf32>
      %89 = vector.shape_cast %88 : vector<1x1xf32> to vector<1x1x1xf32>
      %90 = vector.broadcast %89 : vector<1x1x1xf32> to vector<2x1x128xf32>
      %91 = arith.subf %87, %90 : vector<2x1x128xf32>
      %92 = math.exp %91 : vector<2x1x128xf32>
      %93 = vector.shape_cast %86 : vector<1x1xf32> to vector<1x1x1xf32>
      %94 = vector.broadcast %93 : vector<1x1x1xf32> to vector<2x1x128xf32>
      %95 = arith.mulf %92, %94 : vector<2x1x128xf32>
      %c0_49 = arith.constant 0 : index
      %c0_50 = arith.constant 0 : index
      %c0_51 = arith.constant 0 : index
      %96 = vector.load %arg8[%c0_49, %c0_50, %c0_51] : memref<2x1x128xf32, #tpu.memory_space<vmem>>, vector<2x1x128xf32>
      tpu.vector_store %arg8[%c0_49, %c0_50, %c0_51], %95 {strides = array<i32>} : memref<2x1x128xf32, #tpu.memory_space<vmem>>, vector<2x1x128xf32>,
      %c0_52 = arith.constant 0 : index
      %c0_53 = arith.constant 0 : index
      %97 = vector.load %arg12[%c0_52, %c0_53] : memref<1x64xf32, #tpu.memory_space<vmem>>, vector<1x64xf32>
      %98 = vector.broadcast %86 : vector<1x1xf32> to vector<1x64xf32>
      %99 = arith.mulf %97, %98 : vector<1x64xf32>
      %100 = vector.shape_cast %99 : vector<1x64xf32> to vector<1x64xf32>
      %101 = vector.broadcast %100 : vector<1x64xf32> to vector<2x64xf32>
      %c0_54 = arith.constant 0 : index
      %c0_55 = arith.constant 0 : index
      %102 = vector.load %arg9[%c0_54, %c0_55] : memref<2x64xf32, #tpu.memory_space<vmem>>, vector<2x64xf32>
      tpu.vector_store %arg9[%c0_54, %c0_55], %101 {strides = array<i32>} : memref<2x64xf32, #tpu.memory_space<vmem>>, vector<2x64xf32>,
    } else {
    }
    return
  }
  func.func @transform_0(%arg0: i32) -> (i32, i32) {
    %c0_i32 = arith.constant 0 : i32
    %c0_i32_0 = arith.constant 0 : i32
    return %arg0, %c0_i32 : i32, i32
  }
  func.func @transform_1(%arg0: i32) -> (i32, i32) {
    %c0_i32 = arith.constant 0 : i32
    %c0_i32_0 = arith.constant 0 : i32
    %c0_i32_1 = arith.constant 0 : i32
    return %c0_i32, %c0_i32_0 : i32, i32
  }
  func.func @transform_2(%arg0: i32) -> (i32, i32) {
    %c0_i32 = arith.constant 0 : i32
    %c0_i32_0 = arith.constant 0 : i32
    %c0_i32_1 = arith.constant 0 : i32
    return %c0_i32, %c0_i32_0 : i32, i32
  }
  func.func @transform_3(%arg0: i32) -> (i32, i32) {
    %c0_i32 = arith.constant 0 : i32
    %c0_i32_0 = arith.constant 0 : i32
    %c0_i32_1 = arith.constant 0 : i32
    return %c0_i32, %c0_i32_0 : i32, i32
  }
  func.func @transform_4(%arg0: i32) -> (i32, i32) {
    %c0_i32 = arith.constant 0 : i32
    %c0_i32_0 = arith.constant 0 : i32
    %c0_i32_1 = arith.constant 0 : i32
    return %c0_i32, %c0_i32_0 : i32, i32
  }
  func.func @transform_5(%arg0: i32) -> (i32, i32) {
    %c0_i32 = arith.constant 0 : i32
    %c0_i32_0 = arith.constant 0 : i32
    %c0_i32_1 = arith.constant 0 : i32
    return %c0_i32, %c0_i32_0 : i32, i32
  }
  func.func @transform_6(%arg0: i32) -> (i32, i32) {
    %c0_i32 = arith.constant 0 : i32
    %c0_i32_0 = arith.constant 0 : i32
    %c0_i32_1 = arith.constant 0 : i32
    return %c0_i32, %c0_i32_0 : i32, i32
  }
  func.func @transform_7(%arg0: i32) -> (i32, i32, i32) {
    %c0_i32 = arith.constant 0 : i32
    %c0_i32_0 = arith.constant 0 : i32
    %c0_i32_1 = arith.constant 0 : i32
    %c0_i32_2 = arith.constant 0 : i32
    return %c0_i32, %c0_i32_0, %c0_i32_1 : i32, i32, i32
  }
  func.func @transform_8(%arg0: i32) -> (i32, i32) {
    %c0_i32 = arith.constant 0 : i32
    %c0_i32_0 = arith.constant 0 : i32
    %c0_i32_1 = arith.constant 0 : i32
    return %c0_i32, %c0_i32_0 : i32, i32
  }
}

</mosaic_0001>

<bundles_post_ra>
// kernel: tpu_custom_call.1
= control target key start
LH: loop header
LB: loop body
LE: loop exit
PB: predicated region body
PF: predicated region fallthrough
CT: control target
= control target key end

     0   :  { %s2141_s0 = inlined_call_operand.vmem [shape: f32[256,64], index: 0, kind: input, shape index: {}]   ;;  %s2142_s1 = inlined_call_operand.vmem [shape: f32[64,128], index: 1, kind: input, shape index: {}]   ;;  %s2143_s2 = inlined_call_operand.vmem [shape: f32[1,128], index: 2, kind: input, shape index: {}]   ;;  %s2144_s3 = inlined_call_operand.vmem [shape: f32[1,128], index: 3, kind: input, shape index: {}]   ;;  %s2145_s4 = inlined_call_operand.vmem [shape: f32[1,128], index: 4, kind: input, shape index: {}]   ;;  %s2146_s5 = inlined_call_operand.vmem [shape: f32[1,128], index: 5, kind: input, shape index: {}]   ;;  %s2147_s6 = inlined_call_operand.<no memory space> [shape: f32[1,1], index: 6, kind: input, shape index: {}]   ;;  %s2148_s7 = inlined_call_operand.hbm [shape: f32[2,1,128], index: 7, kind: output, shape index: {0}]   ;;  %s2149_s8 = inlined_call_operand.hbm [shape: f32[2,64], index: 8, kind: output, shape index: {1}]  }
   0x1   :  { %14 = sst [smem:[#allocation5]] %s2147_s6 }
   0x2   :  { %15 = vsyncpa [#allocation7], 0 }
   0x3   :  { %16 = vsyncpa [#allocation9], 0  ;;  %s1654_s29 = smov 0  }
   0x4 LB: > { %s1660_s30 = sadd.s32 4294967295, %s1596_s29   ;;  %p1288_p0 = scmp.ge.s32.totalorder %s1596_s29, 1  ;;  %s1596_s29 = sphi %s1654_s29, %s22_s29  }
   0x5   : > { %p259_p1 = scmp.lt.s32.totalorder %s1596_s29, 3 }
   0x7   : > { %p260_p2 = pnand %p1288_p0, %p259_p1 }
   0x8   : > { %s1289_s6 = sshll.u32 (!%p260_p2), %s1660_s30, 4  ;;  %p1291_p4 = scmp.ne.s32.totalorder (!%p260_p2), %s1660_s30, 0 }
   0x9   : > { %263 = sbr.rel (%p260_p2) target bundleno = 1279 (0x4ff), region = 48  ;;  %p289_p3 = scmp.lt.s32.totalorder (!%p260_p2), %s1289_s6, 31 }
  0x10   : > { %s2151_s6 = smov (!%p289_p3, %s1289_s6), 31  ;;  %297 = sbr.rel (%p1291_p4) target bundleno = 23 (0x17), region = 52 }
  0x11   : > { %s1290_s9 = sshll.u32 %s2151_s6, 3  ;;  %vm298_vm0 = vcmask (!%p1291_p4), 0   ;;  %vm301_vm1 = vcmask (!%p1291_p4), 516096   ;;  %v1598_v0 = vmov (!%p1291_p4), -inf   ;;  %v1599_v1 = vmov (!%p1291_p4), 0.0  }
  0x12   : > { %s1668_s12 = scalar_lea.vmem %s2141_s0, %s1290_s9  ;;  %299 = vst.msk [vmem:[#allocation2] sm:$0x1] (!%p1291_p4), %vm298_vm0, %v1598_v0  ;;  %300 = vst.msk [vmem:[#allocation3] sm:$0x1] (!%p1291_p4), %vm298_vm0, %v1599_v1 }
  0x13   : > { %302 = vst.msk [vmem:[#allocation4] sm:$0x1] (!%p1291_p4), %vm301_vm1, %v1599_v1 }
  0x17 PF: > { %v319_v2 = vld [vmem:[%s2142_s1] sm:$0xff]  ;;  %v320_v3 = vld [vmem:[%s2142_s1 + $0x8] sm:$0xff]  ;;  %v321_v4 = vld [vmem:[%s2142_s1 + $0x10] sm:$0xff]  ;;  %vm334_vm2 = vcmask 523264   ;;  %s822_s17 = sld [smem:[#allocation5]]  ;;  %s1320_s18 = scalar_lea.vmem [#allocation6], %s1596_s29 }
  0x18   : > { %v1387_v5 = vpack.c.bf16 %v320_v3, %v319_v2  ;;  %v322_v6 = vld [vmem:[%s2142_s1 + $0x18] sm:$0xff]  ;;  %v323_v8 = vld [vmem:[%s2142_s1 + $0x20] sm:$0xff]  ;;  %v324_v9 = vld [vmem:[%s2142_s1 + $0x28] sm:$0xff]  ;;  %p1313_p5 = scmp.ne.s32.totalorder %s1660_s30, 1 }
  0x19   : > { %v1391_v7 = vpack.c.bf16 %v322_v6, %v321_v4  ;;  %v303_v10 = vld [vmem:[%s1668_s12] sm:$0xff]  ;;  %v1395_v11 = vpack.c.bf16 %v324_v9, %v323_v8  ;;  %v325_v13 = vld [vmem:[%s2142_s1 + $0x30] sm:$0xff]  ;;  %v326_v14 = vld [vmem:[%s2142_s1 + $0x38] sm:$0xff] }
  0x1a   : > { %1388 = vmatprep.subr.bf16.mxu0 %v1387_v5  ;;  %1363 = vmatprep.mubr.msk.f32.mxu0 %vm334_vm2, %v303_v10  ;;  %v311_v12 = vld [vmem:[%s1668_s12 + $0x40] sm:$0xff]  ;;  %v1399_v15 = vpack.c.bf16 %v326_v14, %v325_v13  ;;  %v304_v16 = vld [vmem:[%s1668_s12 + $0x8] sm:$0xff]  ;;  %v305_v17 = vld [vmem:[%s1668_s12 + $0x10] sm:$0xff] }
  0x1b   : > { %1390 = vmatpush3.bf16.msra.mxu0 %v1387_v5  ;;  %1403 = vmatprep.subr.bf16.mxu1 %v1387_v5  ;;  %v312_v18 = vld [vmem:[%s1668_s12 + $0x48] sm:$0xff]  ;;  %v313_v19 = vld [vmem:[%s1668_s12 + $0x50] sm:$0xff]  ;;  %v306_v20 = vld [vmem:[%s1668_s12 + $0x18] sm:$0xff] }
  0x1c   : > { %1392 = vmatprep.subr.bf16.mxu0 %v1391_v7  ;;  %1407 = vmatpush3.bf16.msra.mxu1 %v1387_v5  ;;  %v307_v21 = vld [vmem:[%s1668_s12 + $0x20] sm:$0xff]  ;;  %v314_v22 = vld [vmem:[%s1668_s12 + $0x58] sm:$0xff]  ;;  %v308_v24 = vld [vmem:[%s1668_s12 + $0x28] sm:$0xff] }
  0x1d   : > { %1404 = vmatprep.subr.bf16.mxu1 %v1391_v7  ;;  %1375 = vmatprep.mubr.msk.f32.mxu1 %vm334_vm2, %v311_v12  ;;  %v315_v23 = vld [vmem:[%s1668_s12 + $0x60] sm:$0xff]  ;;  %v309_v25 = vld [vmem:[%s1668_s12 + $0x30] sm:$0xff]  ;;  %v316_v26 = vld [vmem:[%s1668_s12 + $0x68] sm:$0xff] }
  0x1e   : > { %v317_v27 = vld [vmem:[%s1668_s12 + $0x70] sm:$0xff]  ;;  %v310_v28 = vld [vmem:[%s1668_s12 + $0x38] sm:$0xff]  ;;  %v1292_v30 = vld [vmem:[%s2143_s2] ss:$0 sm:$0xff] }
  0x1f   : > { %1394 = vmatpush3.bf16.msra.mxu0 %v1391_v7  ;;  %v318_v29 = vld [vmem:[%s1668_s12 + $0x78] sm:$0xff] }
  0x20   : > { %1396 = vmatprep.subr.bf16.mxu0 %v1395_v11  ;;  %1408 = vmatpush3.bf16.msra.mxu1 %v1391_v7 }
  0x21   : > { %1405 = vmatprep.subr.bf16.mxu1 %v1395_v11 }
  0x23   : > { %1398 = vmatpush3.bf16.msra.mxu0 %v1395_v11 }
  0x24   : > { %1400 = vmatprep.subr.bf16.mxu0 %v1399_v15  ;;  %1409 = vmatpush3.bf16.msra.mxu1 %v1395_v11 }
  0x25   : > { %1406 = vmatprep.subr.bf16.mxu1 %v1399_v15 }
  0x27   : > { %1402 = vmatpush3.bf16.msra.mxu0 %v1399_v15 }
  0x28   : > { %1410 = vmatpush3.bf16.msra.mxu1 %v1399_v15 }
  0x2a   : > { %1364 = vmatmul.mubr.msk.f32.vlgmr.msra.gmra.mrb[0].mxu0 %vm334_vm2, %v304_v16 }
  0x2b   : > { %1366 = vmatprep.mubr.msk.f32.mxu0 %vm334_vm2, %v305_v17  ;;  %1376 = vmatmul.mubr.msk.f32.vlgmr.msra.gmra.mrb[0].mxu1 %vm334_vm2, %v312_v18 }
  0x2c   : > { %1378 = vmatprep.mubr.msk.f32.mxu1 %vm334_vm2, %v313_v19 }
  0x2e   : > { %1367 = vmatmul.mubr.msk.f32.gmra.mrb[2].mxu0 %vm334_vm2, %v306_v20 }
  0x2f   : > { %1369 = vmatprep.mubr.msk.f32.mxu0 %vm334_vm2, %v307_v21  ;;  %1379 = vmatmul.mubr.msk.f32.gmra.mrb[2].mxu1 %vm334_vm2, %v314_v22 }
  0x30   : > { %1381 = vmatprep.mubr.msk.f32.mxu1 %vm334_vm2, %v315_v23 }
  0x32   : > { %1370 = vmatmul.mubr.msk.f32.gmra.mrb[4].mxu0 %vm334_vm2, %v308_v24 }
  0x33   : > { %1372 = vmatprep.mubr.msk.f32.mxu0 %vm334_vm2, %v309_v25  ;;  %1382 = vmatmul.mubr.msk.f32.gmra.mrb[4].mxu1 %vm334_vm2, %v316_v26 }
  0x34   : > { %1384 = vmatprep.mubr.msk.f32.mxu1 %vm334_vm2, %v317_v27 }
  0x36   : > { %1373 = vmatmul.mubr.msk.f32.gmra.mrb[6].mxu0 %vm334_vm2, %v310_v28 }
  0x37   : > { %1385 = vmatmul.mubr.msk.f32.gmra.mrb[6].mxu1 %vm334_vm2, %v318_v29 }
  0xfd   : > { %v1365_v31 = vpop.f32.mrb[0].mxu0 }
  0xfe   : > { %v449_v32 = vpop.f32.mrb[1].mxu0  ;;  %v1377_v33 = vpop.f32.mrb[0].mxu1  ;;  %v455_v39 = vadd.f32 %v1365_v31, %v1292_v30 }
  0xff   : > { %v450_v34 = vadd.f32 %v1292_v30, %v449_v32  ;;  %v489_v35 = vpop.f32.mrb[1].mxu1  ;;  %v495_v57 = vadd.f32 %v1377_v33, %v1292_v30 }
 0x100   : > { %v490_v54 = vadd.f32 %v1292_v30, %v489_v35 }
 0x101   : > { %v1368_v36 = vpop.f32.mrb[2].mxu0  ;;  %528 = vadd.xlane.f32.xlu0 %v450_v34 }
 0x102   : > { %v459_v37 = vpop.f32.mrb[3].mxu0  ;;  %v1380_v38 = vpop.f32.mrb[2].mxu1  ;;  %v465_v45 = vadd.f32 %v1368_v36, %v1292_v30 }
 0x103   : > { %v460_v40 = vadd.f32 %v1292_v30, %v459_v37  ;;  %v499_v41 = vpop.f32.mrb[3].mxu1  ;;  %v1732_v59 = vadd.f32 %v1380_v38, %v1292_v30 }
 0x104   : > { %v500_v56 = vadd.f32 %v1292_v30, %v499_v41 }
 0x105   : > { %v1371_v42 = vpop.f32.mrb[4].mxu0  ;;  %532 = vadd.xlane.f32.xlu1 %v460_v40  ;;  %530 = vadd.xlane.f32.xlu0 %v455_v39 }
 0x106   : > { %v469_v43 = vpop.f32.mrb[5].mxu0  ;;  %v1383_v44 = vpop.f32.mrb[4].mxu1  ;;  %v475_v51 = vadd.f32 %v1371_v42, %v1292_v30 }
 0x107   : > { %v470_v46 = vadd.f32 %v1292_v30, %v469_v43  ;;  %v509_v47 = vpop.f32.mrb[5].mxu1  ;;  %v1738_v61 = vadd.f32 %v1383_v44, %v1292_v30 }
 0x108   : > { %v1730_v58 = vadd.f32 %v1292_v30, %v509_v47 }
 0x109   : > { %v1374_v48 = vpop.f32.mrb[6].mxu0  ;;  %534 = vadd.xlane.f32.xlu1 %v465_v45  ;;  %536 = vadd.xlane.f32.xlu0 %v470_v46 }
 0x10a   : > { %v479_v49 = vpop.f32.mrb[7].mxu0  ;;  %v1386_v50 = vpop.f32.mrb[6].mxu1  ;;  %v485_v55 = vadd.f32 %v1374_v48, %v1292_v30 }
 0x10b   : > { %v480_v52 = vadd.f32 %v1292_v30, %v479_v49  ;;  %v519_v53 = vpop.f32.mrb[7].mxu1  ;;  %v1742_v62 = vadd.f32 %v1386_v50, %v1292_v30 }
 0x10c   : > { %v1736_v60 = vadd.f32 %v1292_v30, %v519_v53 }
 0x10d   : > { %538 = vadd.xlane.f32.xlu1 %v475_v51  ;;  %540 = vadd.xlane.f32.xlu0 %v480_v52 }
 0x111   : > { %542 = vadd.xlane.f32.xlu1 %v485_v55  ;;  %544 = vadd.xlane.f32.xlu0 %v490_v54 }
 0x115   : > { %546 = vadd.xlane.f32.xlu1 %v495_v57  ;;  %548 = vadd.xlane.f32.xlu0 %v500_v56 }
 0x119   : > { %550 = vadd.xlane.f32.xlu1 %v1732_v59  ;;  %552 = vadd.xlane.f32.xlu0 %v1730_v58 }
 0x11d   : > { %554 = vadd.xlane.f32.xlu1 %v1738_v61  ;;  %556 = vadd.xlane.f32.xlu0 %v1736_v60 }
 0x121   : > { %558 = vadd.xlane.f32.xlu1 %v1742_v62 }
 0x18e   : > { %v529_v63 = vpop.xlane.xlu0 %528 }
 0x18f   : > { %v561_v0 = vmul.f32 0.0078125, %v529_v63 }
 0x191   : > { %v1745_v1 = vsub.f32 %v450_v34, %v561_v0 }
 0x192   : > { %v533_v2 = vpop.xlane.xlu1 %532  ;;  %v531_v3 = vpop.xlane.xlu0 %530 }
 0x193   : > { %v563_v4 = vmul.f32 0.0078125, %v533_v2  ;;  %v562_v5 = vmul.f32 0.0078125, %v531_v3  ;;  %v593_v6 = vmul.f32 %v1745_v1, %v1745_v1 }
 0x195   : > { %v1749_v7 = vsub.f32 %v460_v40, %v563_v4  ;;  %v1751_v8 = vsub.f32 %v455_v39, %v562_v5  ;;  %609 = vadd.xlane.f32.xlu0 %v593_v6 }
 0x196   : > { %v535_v9 = vpop.xlane.xlu1 %534  ;;  %v537_v10 = vpop.xlane.xlu0 %536 }
 0x197   : > { %v564_v11 = vmul.f32 0.0078125, %v535_v9  ;;  %v565_v12 = vmul.f32 0.0078125, %v537_v10  ;;  %v595_v13 = vmul.f32 %v1749_v7, %v1749_v7  ;;  %v594_v14 = vmul.f32 %v1751_v8, %v1751_v8 }
 0x199   : > { %v1757_v15 = vsub.f32 %v465_v45, %v564_v11  ;;  %v1759_v16 = vsub.f32 %v470_v46, %v565_v12  ;;  %613 = vadd.xlane.f32.xlu0 %v595_v13  ;;  %611 = vadd.xlane.f32.xlu1 %v594_v14 }
 0x19a   : > { %v539_v17 = vpop.xlane.xlu1 %538  ;;  %v541_v18 = vpop.xlane.xlu0 %540 }
 0x19b   : > { %v566_v19 = vmul.f32 0.0078125, %v539_v17  ;;  %v567_v20 = vmul.f32 0.0078125, %v541_v18  ;;  %v596_v21 = vmul.f32 %v1757_v15, %v1757_v15  ;;  %v597_v22 = vmul.f32 %v1759_v16, %v1759_v16 }
 0x19d   : > { %v1765_v23 = vsub.f32 %v475_v51, %v566_v19  ;;  %v1767_v24 = vsub.f32 %v480_v52, %v567_v20  ;;  %615 = vadd.xlane.f32.xlu1 %v596_v21  ;;  %617 = vadd.xlane.f32.xlu0 %v597_v22 }
 0x19e   : > { %v543_v25 = vpop.xlane.xlu1 %542  ;;  %v545_v26 = vpop.xlane.xlu0 %544 }
 0x19f   : > { %v568_v27 = vmul.f32 0.0078125, %v543_v25  ;;  %v569_v28 = vmul.f32 0.0078125, %v545_v26  ;;  %v598_v29 = vmul.f32 %v1765_v23, %v1765_v23  ;;  %v599_v30 = vmul.f32 %v1767_v24, %v1767_v24 }
 0x1a1   : > { %v1773_v31 = vsub.f32 %v485_v55, %v568_v27  ;;  %v1775_v32 = vsub.f32 %v490_v54, %v569_v28  ;;  %619 = vadd.xlane.f32.xlu1 %v598_v29  ;;  %621 = vadd.xlane.f32.xlu0 %v599_v30  ;;  %v1817_v28 = vld [vmem:[%s2144_s3] ss:$0 sm:$0xff] }
 0x1a2   : > { %v547_v33 = vpop.xlane.xlu1 %546  ;;  %v549_v34 = vpop.xlane.xlu0 %548 }
 0x1a3   : > { %v570_v35 = vmul.f32 0.0078125, %v547_v33  ;;  %v571_v36 = vmul.f32 0.0078125, %v549_v34  ;;  %v600_v37 = vmul.f32 %v1773_v31, %v1773_v31  ;;  %v601_v38 = vmul.f32 %v1775_v32, %v1775_v32 }
 0x1a5   : > { %v1781_v39 = vsub.f32 %v495_v57, %v570_v35  ;;  %v1783_v40 = vsub.f32 %v500_v56, %v571_v36  ;;  %623 = vadd.xlane.f32.xlu1 %v600_v37  ;;  %625 = vadd.xlane.f32.xlu0 %v601_v38  ;;  %v1823_v36 = vld [vmem:[%s2145_s4] ss:$0 sm:$0xff] }
 0x1a6   : > { %v551_v41 = vpop.xlane.xlu1 %550  ;;  %v553_v42 = vpop.xlane.xlu0 %552 }
 0x1a7   : > { %v572_v43 = vmul.f32 0.0078125, %v551_v41  ;;  %v573_v44 = vmul.f32 0.0078125, %v553_v42  ;;  %v602_v45 = vmul.f32 %v1781_v39, %v1781_v39  ;;  %v603_v46 = vmul.f32 %v1783_v40, %v1783_v40 }
 0x1a9   : > { %v1790_v47 = vsub.f32 %v1732_v59, %v572_v43  ;;  %v1793_v48 = vsub.f32 %v1730_v58, %v573_v44  ;;  %627 = vadd.xlane.f32.xlu1 %v602_v45  ;;  %629 = vadd.xlane.f32.xlu0 %v603_v46 }
 0x1aa   : > { %v555_v49 = vpop.xlane.xlu1 %554  ;;  %v557_v50 = vpop.xlane.xlu0 %556 }
 0x1ab   : > { %v574_v51 = vmul.f32 0.0078125, %v555_v49  ;;  %v575_v52 = vmul.f32 0.0078125, %v557_v50  ;;  %v604_v53 = vmul.f32 %v1790_v47, %v1790_v47  ;;  %v605_v54 = vmul.f32 %v1793_v48, %v1793_v48 }
 0x1ad   : > { %v1800_v55 = vsub.f32 %v1738_v61, %v574_v51  ;;  %v1803_v56 = vsub.f32 %v1736_v60, %v575_v52  ;;  %631 = vadd.xlane.f32.xlu1 %v604_v53  ;;  %633 = vadd.xlane.f32.xlu0 %v605_v54  ;;  %v1831_v51 = vld [vmem:[%s2146_s5] ss:$0 sm:$0xff] }
 0x1ae   : > { %v559_v57 = vpop.xlane.xlu1 %558 }
 0x1af   : > { %v576_v58 = vmul.f32 0.0078125, %v559_v57  ;;  %v606_v59 = vmul.f32 %v1800_v55, %v1800_v55  ;;  %v607_v63 = vmul.f32 %v1803_v56, %v1803_v56 }
 0x1b1   : > { %v1810_v0 = vsub.f32 %v1742_v62, %v576_v58  ;;  %635 = vadd.xlane.f32.xlu1 %v606_v59  ;;  %637 = vadd.xlane.f32.xlu0 %v607_v63 }
 0x1b3   : > { %v608_v61 = vmul.f32 %v1810_v0, %v1810_v0 }
 0x1b5   : > { %639 = vadd.xlane.f32.xlu1 %v608_v61 }
 0x222   : > { %v610_v60 = vpop.xlane.xlu0 %609 }
 0x223   : > { %v641_v2 = vmul.f32 0.0078125, %v610_v60 }
 0x225   : > { %v657_v3 = vadd.f32 1e-05, %v641_v2 }
 0x226   : > { %v612_v4 = vpop.xlane.xlu1 %611  ;;  %v614_v5 = vpop.xlane.xlu0 %613 }
 0x227   : > { %1441 = vrsqrt.f32 %v657_v3  ;;  %v642_v6 = vmul.f32 0.0078125, %v612_v4  ;;  %v643_v9 = vmul.f32 0.0078125, %v614_v5 }
 0x229   : > { %v658_v10 = vadd.f32 1e-05, %v642_v6  ;;  %v659_v11 = vadd.f32 1e-05, %v643_v9 }
 0x22a   : > { %v616_v12 = vpop.xlane.xlu1 %615  ;;  %v618_v13 = vpop.xlane.xlu0 %617 }
 0x22b   : > { %1443 = vrsqrt.f32 %v658_v10  ;;  %v644_v62 = vmul.f32 0.0078125, %v616_v12  ;;  %v645_v14 = vmul.f32 0.0078125, %v618_v13 }
 0x22c   : > { %1445 = vrsqrt.f32 %v659_v11 }
 0x22d   : > { %v660_v17 = vadd.f32 1e-05, %v644_v62  ;;  %v661_v18 = vadd.f32 1e-05, %v645_v14 }
 0x22e   : > { %v620_v19 = vpop.xlane.xlu1 %619  ;;  %v622_v20 = vpop.xlane.xlu0 %621 }
 0x22f   : > { %1447 = vrsqrt.f32 %v660_v17  ;;  %v646_v21 = vmul.f32 0.0078125, %v620_v19  ;;  %v647_v22 = vmul.f32 0.0078125, %v622_v20 }
 0x230   : > { %1449 = vrsqrt.f32 %v661_v18 }
 0x231   : > { %v1442_v25 = vpop.eup %1441  ;;  %v662_v26 = vadd.f32 1e-05, %v646_v21  ;;  %v663_v27 = vadd.f32 1e-05, %v647_v22 }
 0x232   : > { %v624_v29 = vpop.xlane.xlu1 %623  ;;  %v626_v30 = vpop.xlane.xlu0 %625  ;;  %v689_v33 = vmul.f32 %v1442_v25, %v1745_v1 }
 0x233   : > { %1451 = vrsqrt.f32 %v662_v26  ;;  %v648_v34 = vmul.f32 0.0078125, %v624_v29  ;;  %v649_v35 = vmul.f32 0.0078125, %v626_v30 }
 0x234   : > { %1453 = vrsqrt.f32 %v663_v27  ;;  %v712_v37 = vmul.f32 %v1817_v28, %v689_v33 }
 0x235   : > { %v1444_v38 = vpop.eup %1443  ;;  %v664_v41 = vadd.f32 1e-05, %v648_v34  ;;  %v665_v42 = vadd.f32 1e-05, %v649_v35 }
 0x236   : > { %v1446_v43 = vpop.eup %1445  ;;  %v628_v44 = vpop.xlane.xlu1 %627  ;;  %v735_v46 = vadd.f32 %v1823_v36, %v712_v37  ;;  %v690_v1 = vmul.f32 %v1444_v38, %v1751_v8 }
 0x237   : > { %v630_v45 = vpop.xlane.xlu0 %629  ;;  %1455 = vrsqrt.f32 %v664_v41  ;;  %v650_v49 = vmul.f32 0.0078125, %v628_v44  ;;  %v691_v52 = vmul.f32 %v1446_v43, %v1749_v7 }
 0x238   : > { %v651_v50 = vmul.f32 0.0078125, %v630_v45  ;;  %1457 = vrsqrt.f32 %v665_v42  ;;  %v751_v53 = vmax.f32 %v735_v46, 0.0  ;;  %v713_v54 = vmul.f32 %v1817_v28, %v690_v1 }
 0x239   : > { %v1448_v57 = vpop.eup %1447  ;;  %v666_v58 = vadd.f32 1e-05, %v650_v49  ;;  %v714_v63 = vmul.f32 %v1817_v28, %v691_v52 }
 0x23a   : > { %v667_v59 = vadd.f32 1e-05, %v651_v50  ;;  %v1450_v8 = vpop.eup %1449  ;;  %v632_v61 = vpop.xlane.xlu1 %631  ;;  %v774_v2 = vmul.f32 %v1831_v51, %v751_v53  ;;  %v736_v3 = vadd.f32 %v1823_v36, %v713_v54  ;;  %v692_v4 = vmul.f32 %v1448_v57, %v1757_v15 }
 0x23b   : > { %v634_v60 = vpop.xlane.xlu0 %633  ;;  %1459 = vrsqrt.f32 %v666_v58  ;;  %v652_v7 = vmul.f32 0.0078125, %v632_v61  ;;  %v737_v6 = vadd.f32 %v1823_v36, %v714_v63  ;;  %v693_v11 = vmul.f32 %v1450_v8, %v1759_v16 }
 0x23c   : > { %v653_v5 = vmul.f32 0.0078125, %v634_v60  ;;  %1461 = vrsqrt.f32 %v667_v59  ;;  %790 = vadd.xlane.f32.xlu0 %v774_v2  ;;  %v752_v9 = vmax.f32 %v736_v3, 0.0  ;;  %v715_v10 = vmul.f32 %v1817_v28, %v692_v4 }
 0x23d   : > { %v1452_v12 = vpop.eup %1451  ;;  %v668_v13 = vadd.f32 1e-05, %v652_v7  ;;  %v753_v14 = vmax.f32 %v737_v6, 0.0  ;;  %v716_v21 = vmul.f32 %v1817_v28, %v693_v11 }
 0x23e   : > { %v669_v62 = vadd.f32 1e-05, %v653_v5  ;;  %v1454_v17 = vpop.eup %1453  ;;  %v636_v18 = vpop.xlane.xlu1 %635  ;;  %v775_v15 = vmul.f32 %v1831_v51, %v752_v9  ;;  %v738_v20 = vadd.f32 %v1823_v36, %v715_v10  ;;  %v694_v22 = vmul.f32 %v1452_v12, %v1765_v23 }
 0x23f   : > { %v638_v19 = vpop.xlane.xlu0 %637  ;;  %1463 = vrsqrt.f32 %v668_v13  ;;  %v654_v25 = vmul.f32 0.0078125, %v636_v18  ;;  %v776_v16 = vmul.f32 %v1831_v51, %v753_v14  ;;  %v739_v29 = vadd.f32 %v1823_v36, %v716_v21 }
 0x240   : > { %v655_v26 = vmul.f32 0.0078125, %v638_v19  ;;  %1465 = vrsqrt.f32 %v669_v62  ;;  %792 = vadd.xlane.f32.xlu1 %v775_v15  ;;  %v754_v27 = vmax.f32 %v738_v20, 0.0  ;;  %v717_v30 = vmul.f32 %v1817_v28, %v694_v22 }
 0x241   : > { %v1456_v33 = vpop.eup %1455  ;;  %v670_v34 = vadd.f32 1e-05, %v654_v25  ;;  %794 = vadd.xlane.f32.xlu0 %v776_v16  ;;  %v695_v37 = vmul.f32 %v1454_v17, %v1767_v24  ;;  %v755_v42 = vmax.f32 %v739_v29, 0.0 }
 0x242   : > { %v671_v35 = vadd.f32 1e-05, %v655_v26  ;;  %v1458_v38 = vpop.eup %1457  ;;  %v640_v23 = vpop.xlane.xlu1 %639  ;;  %v777_v41 = vmul.f32 %v1831_v51, %v754_v27  ;;  %v740_v43 = vadd.f32 %v1823_v36, %v717_v30  ;;  %v696_v44 = vmul.f32 %v1456_v33, %v1773_v31 }
 0x243   : > { %1467 = vrsqrt.f32 %v670_v34  ;;  %v656_v45 = vmul.f32 0.0078125, %v640_v23  ;;  %v718_v46 = vmul.f32 %v1817_v28, %v695_v37  ;;  %v697_v1 = vmul.f32 %v1458_v38, %v1775_v32 }
 0x244   : > { %1469 = vrsqrt.f32 %v671_v35  ;;  %796 = vadd.xlane.f32.xlu1 %v777_v41  ;;  %v778_v49 = vmul.f32 %v1831_v51, %v755_v42  ;;  %v756_v24 = vmax.f32 %v740_v43, 0.0  ;;  %v719_v50 = vmul.f32 %v1817_v28, %v696_v44 }
 0x245   : > { %v1460_v52 = vpop.eup %1459  ;;  %v672_v53 = vadd.f32 1e-05, %v656_v45  ;;  %v741_v54 = vadd.f32 %v1823_v36, %v718_v46  ;;  %v720_v57 = vmul.f32 %v1817_v28, %v697_v1  ;;  %v840_v44 = vlaneseq }
 0x246   : > { %v1462_v31 = vpop.eup %1461  ;;  %798 = vadd.xlane.f32.xlu0 %v778_v49  ;;  %v779_v58 = vmul.f32 %v1831_v51, %v756_v24  ;;  %v742_v59 = vadd.f32 %v1823_v36, %v719_v50  ;;  %v698_v32 = vmul.f32 %v1460_v52, %v1781_v39  ;;  %v1895_v46 = vstv %s822_s17 }
 0x247   : > { %1471 = vrsqrt.f32 %v672_v53  ;;  %v757_v63 = vmax.f32 %v741_v54, 0.0  ;;  %v743_v8 = vadd.f32 %v1823_v36, %v720_v57  ;;  %v699_v61 = vmul.f32 %v1462_v31, %v1783_v40 }
 0x248   : > { %800 = vadd.xlane.f32.xlu1 %v779_v58  ;;  %v758_v60 = vmax.f32 %v742_v59, 0.0  ;;  %v721_v2 = vmul.f32 %v1817_v28, %v698_v32  ;;  %v1893_v45 = vshrl.u32 %v840_v44, 7 }
 0x249   : > { %v1464_v3 = vpop.eup %1463  ;;  %v780_v4 = vmul.f32 %v1831_v51, %v757_v63  ;;  %v759_v7 = vmax.f32 %v743_v8, 0.0  ;;  %v722_v5 = vmul.f32 %v1817_v28, %v699_v61 }
 0x24a   : > { %v1466_v6 = vpop.eup %1465  ;;  %v781_v9 = vmul.f32 %v1831_v51, %v758_v60  ;;  %v744_v39 = vadd.f32 %v1823_v36, %v721_v2  ;;  %v700_v10 = vmul.f32 %v1464_v3, %v1790_v47  ;;  %v843_v49 = vadd.s32 16, %v1893_v45 }
 0x24b   : > { %802 = vadd.xlane.f32.xlu0 %v780_v4  ;;  %v782_v40 = vmul.f32 %v1831_v51, %v759_v7  ;;  %v745_v11 = vadd.f32 %v1823_v36, %v722_v5  ;;  %v701_v12 = vmul.f32 %v1466_v6, %v1793_v48  ;;  %v844_v50 = vadd.s32 24, %v1893_v45 }
 0x24c   : > { %804 = vadd.xlane.f32.xlu1 %v781_v9  ;;  %v760_v13 = vmax.f32 %v744_v39, 0.0  ;;  %v723_v62 = vmul.f32 %v1817_v28, %v700_v10  ;;  %v845_v57 = vadd.s32 32, %v1893_v45  ;;  %v846_v63 = vadd.s32 40, %v1893_v45 }
 0x24d   : > { %v1468_v14 = vpop.eup %1467  ;;  %v761_v17 = vmax.f32 %v745_v11, 0.0  ;;  %v724_v18 = vmul.f32 %v1817_v28, %v701_v12  ;;  %v847_v7 = vadd.s32 48, %v1893_v45  ;;  %v848_v9 = vadd.s32 56, %v1893_v45 }
 0x24e   : > { %v1470_v19 = vpop.eup %1469  ;;  %v783_v15 = vmul.f32 %v1831_v51, %v760_v13  ;;  %v746_v47 = vadd.f32 %v1823_v36, %v723_v62  ;;  %v702_v20 = vmul.f32 %v1468_v14, %v1800_v55  ;;  %v849_v13 = vadd.s32 64, %v1893_v45 }
 0x24f   : > { %806 = vadd.xlane.f32.xlu0 %v782_v40  ;;  %v784_v21 = vmul.f32 %v1831_v51, %v761_v17  ;;  %v747_v48 = vadd.f32 %v1823_v36, %v724_v18  ;;  %v703_v22 = vmul.f32 %v1470_v19, %v1803_v56  ;;  %v850_v18 = vadd.s32 72, %v1893_v45 }
 0x250   : > { %808 = vadd.xlane.f32.xlu1 %v783_v15  ;;  %v762_v25 = vmax.f32 %v746_v47, 0.0  ;;  %v725_v26 = vmul.f32 %v1817_v28, %v702_v20 }
 0x251   : > { %v1472_v16 = vpop.eup %1471  ;;  %v763_v27 = vmax.f32 %v747_v48, 0.0  ;;  %v726_v29 = vmul.f32 %v1817_v28, %v703_v22  ;;  %v851_v48 = vadd.s32 80, %v1893_v45 }
 0x252   : > { %v785_v30 = vmul.f32 %v1831_v51, %v762_v25  ;;  %v748_v33 = vadd.f32 %v1823_v36, %v725_v26  ;;  %v704_v55 = vmul.f32 %v1472_v16, %v1810_v0  ;;  %v852_v26 = vadd.s32 88, %v1893_v45 }
 0x253   : > { %810 = vadd.xlane.f32.xlu0 %v784_v21  ;;  %v786_v34 = vmul.f32 %v1831_v51, %v763_v27  ;;  %v749_v35 = vadd.f32 %v1823_v36, %v726_v29 }
 0x254   : > { %812 = vadd.xlane.f32.xlu1 %v785_v30  ;;  %v764_v56 = vmax.f32 %v748_v33, 0.0  ;;  %v727_v37 = vmul.f32 %v1817_v28, %v704_v55  ;;  %v1897_v28 = vand.u32 127, %v840_v44  ;;  %v855_v44 = vadd.s32 112, %v1893_v45 }
 0x255   : > { %v765_v38 = vmax.f32 %v749_v35, 0.0 }
 0x256   : > { %v787_v23 = vmul.f32 %v1831_v51, %v764_v56  ;;  %v750_v41 = vadd.f32 %v1823_v36, %v727_v37  ;;  %v842_v36 = vadd.s32 8, %v1893_v45  ;;  %vm859_vm3 = vcmp.eq.s32.totalorder %v1893_v45, %v1897_v28 }
 0x257   : > { %814 = vadd.xlane.f32.xlu0 %v786_v34  ;;  %v788_v42 = vmul.f32 %v1831_v51, %v765_v38  ;;  %vm861_vm5 = vcmp.eq.s32.totalorder %v843_v49, %v1897_v28  ;;  %vm862_vm6 = vcmp.eq.s32.totalorder %v844_v50, %v1897_v28  ;;  %vm863_vm7 = vcmp.eq.s32.totalorder %v845_v57, %v1897_v28 }
 0x258   : > { %816 = vadd.xlane.f32.xlu1 %v787_v23  ;;  %v766_v43 = vmax.f32 %v750_v41, 0.0  ;;  %vm860_vm4 = vcmp.eq.s32.totalorder %v842_v36, %v1897_v28  ;;  %vm864_vm8 = vcmp.eq.s32.totalorder %v846_v63, %v1897_v28  ;;  %vm865_vm9 = vcmp.eq.s32.totalorder %v847_v7, %v1897_v28 }
 0x259   : > { %vm866_vm10 = vcmp.eq.s32.totalorder %v848_v9, %v1897_v28  ;;  %vm867_vm11 = vcmp.eq.s32.totalorder %v849_v13, %v1897_v28  ;;  %vm868_vm12 = vcmp.eq.s32.totalorder %v850_v18, %v1897_v28  ;;  %vm869_vm13 = vcmp.eq.s32.totalorder %v851_v48, %v1897_v28 }
 0x25a   : > { %v789_v0 = vmul.f32 %v1831_v51, %v766_v43  ;;  %v853_v34 = vadd.s32 96, %v1893_v45  ;;  %vm870_vm14 = vcmp.eq.s32.totalorder %v852_v26, %v1897_v28  ;;  %v854_v37 = vadd.s32 104, %v1893_v45 }
 0x25b   : > { %818 = vadd.xlane.f32.xlu0 %v788_v42  ;;  %v856_v49 = vadd.s32 120, %v1893_v45  ;;  %vm873_vm1 = vcmp.eq.s32.totalorder %v855_v44, %v1897_v28 }
 0x25c   : > { %820 = vadd.xlane.f32.xlu1 %v789_v0  ;;  %vm871_vm15 = vcmp.eq.s32.totalorder %v853_v34, %v1897_v28  ;;  %vm872_vm0 = vcmp.eq.s32.totalorder %v854_v37, %v1897_v28 }
 0x2c9   : > { %v791_v1 = vpop.xlane.xlu0 %790 }
 0x2ca   : > { %v1902_v24 = vadd.f32 %v1895_v46, %v791_v1 }
 0x2cc   : > { %v875_v31 = vsel %vm859_vm3, %v1902_v24, 0.0  ;;  %vm874_vm3 = vcmp.eq.s32.totalorder %v856_v49, %v1897_v28  ;;  %v1600_v28 = vmov 0  }
 0x2cd   : > { %v793_v51 = vpop.xlane.xlu1 %792  ;;  %1440 = vset.pattern.permute.xlu0 %v1600_v28  ;;  %1439 = vset.pattern.permute.xlu1 %v1600_v28 }
 0x2ce   : > { %v1909_v52 = vadd.f32 %v1895_v46, %v793_v51  ;;  %v795_v53 = vpop.xlane.xlu0 %794 }
 0x2cf   : > { %v1913_v54 = vadd.f32 %v1895_v46, %v795_v53 }
 0x2d0   : > { %v876_v58 = vsel %vm860_vm4, %v1909_v52, 0.0  ;;  %vm1016_vm4 = vcmask 0  }
 0x2d1   : > { %v891_v59 = vadd.f32 %v876_v58, %v875_v31  ;;  %v797_v32 = vpop.xlane.xlu1 %796  ;;  %v877_v8 = vsel %vm861_vm5, %v1913_v54, 0.0  ;;  %vm977_vm5 = vcmask 7168  }
 0x2d2   : > { %v1922_v61 = vadd.f32 %v1895_v46, %v797_v32 }
 0x2d3   : > { %v892_v60 = vadd.f32 %v891_v59, %v877_v8  ;;  %v799_v2 = vpop.xlane.xlu0 %798 }
 0x2d4   : > { %v878_v3 = vsel %vm862_vm6, %v1922_v61, 0.0  ;;  %v1927_v4 = vadd.f32 %v1895_v46, %v799_v2  ;;  %vm1163_vm6 = vcmask 516096  }
 0x2d5   : > { %v893_v5 = vadd.f32 %v892_v60, %v878_v3  ;;  %v801_v6 = vpop.xlane.xlu1 %800 }
 0x2d6   : > { %v879_v39 = vsel %vm863_vm7, %v1927_v4, 0.0  ;;  %v1934_v10 = vadd.f32 %v1895_v46, %v801_v6 }
 0x2d7   : > { %v894_v40 = vadd.f32 %v893_v5, %v879_v39 }
 0x2d8   : > { %v880_v11 = vsel %vm864_vm8, %v1934_v10, 0.0  ;;  %v803_v12 = vpop.xlane.xlu0 %802 }
 0x2d9   : > { %v895_v62 = vadd.f32 %v894_v40, %v880_v11  ;;  %v1940_v14 = vadd.f32 %v1895_v46, %v803_v12  ;;  %v805_v17 = vpop.xlane.xlu1 %804  ;;  %v1999_v12 = vsub.s32 0, %v1893_v45 }
 0x2da   : > { %v1945_v19 = vadd.f32 %v1895_v46, %v805_v17 }
 0x2db   : > { %v881_v15 = vsel %vm865_vm9, %v1940_v14, 0.0 }
 0x2dc   : > { %v896_v47 = vadd.f32 %v895_v62, %v881_v15  ;;  %v882_v20 = vsel %vm866_vm10, %v1945_v19, 0.0  ;;  %v807_v21 = vpop.xlane.xlu0 %806 }
 0x2dd   : > { %v1952_v22 = vadd.f32 %v1895_v46, %v807_v21  ;;  %v809_v25 = vpop.xlane.xlu1 %808 }
 0x2de   : > { %v897_v16 = vadd.f32 %v896_v47, %v882_v20  ;;  %v1957_v27 = vadd.f32 %v1895_v46, %v809_v25 }
 0x2df   : > { %v883_v29 = vsel %vm867_vm11, %v1952_v22, 0.0 }
 0x2e0   : > { %v898_v30 = vadd.f32 %v897_v16, %v883_v29  ;;  %v884_v33 = vsel %vm868_vm12, %v1957_v27, 0.0  ;;  %v811_v55 = vpop.xlane.xlu0 %810 }
 0x2e1   : > { %v1964_v35 = vadd.f32 %v1895_v46, %v811_v55  ;;  %v813_v56 = vpop.xlane.xlu1 %812 }
 0x2e2   : > { %v899_v38 = vadd.f32 %v898_v30, %v884_v33  ;;  %v1969_v23 = vadd.f32 %v1895_v46, %v813_v56 }
 0x2e3   : > { %v885_v41 = vsel %vm869_vm13, %v1964_v35, 0.0 }
 0x2e4   : > { %v900_v42 = vadd.f32 %v899_v38, %v885_v41  ;;  %v886_v43 = vsel %vm870_vm14, %v1969_v23, 0.0  ;;  %v815_v0 = vpop.xlane.xlu0 %814 }
 0x2e5   : > { %v1976_v1 = vadd.f32 %v1895_v46, %v815_v0  ;;  %v817_v36 = vpop.xlane.xlu1 %816 }
 0x2e6   : > { %v901_v51 = vadd.f32 %v900_v42, %v886_v43  ;;  %v1981_v50 = vadd.f32 %v1895_v46, %v817_v36 }
 0x2e7   : > { %v887_v53 = vsel %vm871_vm15, %v1976_v1, 0.0 }
 0x2e8   : > { %v902_v57 = vadd.f32 %v901_v51, %v887_v53  ;;  %v888_v31 = vsel %vm872_vm0, %v1981_v50, 0.0  ;;  %v819_v58 = vpop.xlane.xlu0 %818 }
 0x2e9   : > { %v1987_v59 = vadd.f32 %v1895_v46, %v819_v58  ;;  %v821_v32 = vpop.xlane.xlu1 %820 }
 0x2ea   : > { %v903_v63 = vadd.f32 %v902_v57, %v888_v31  ;;  %v1991_v8 = vadd.f32 %v1895_v46, %v821_v32  ;;  %v1996_v46 = vld [vmem:[#allocation2] sm:$0x1] }
 0x2eb   : > { %v889_v60 = vsel %vm873_vm1, %v1987_v59, 0.0 }
 0x2ec   : > { %v904_v2 = vadd.f32 %v903_v63, %v889_v60  ;;  %v890_v3 = vsel %vm874_vm3, %v1991_v8, 0.0 }
 0x2ee   : > { %v905_v7 = vadd.f32 %v904_v2, %v890_v3 }
 0x2f0   : > { %v906_v5 = vrot.slane %v905_v7, 4 }
 0x2f2   : > { %v907_v6 = vadd.f32 %v906_v5, %v905_v7 }
 0x2f4   : > { %v908_v9 = vrot.slane %v907_v6, 2 }
 0x2f6   : > { %v909_v39 = vadd.f32 %v908_v9, %v907_v6 }
 0x2f8   : > { %v910_v40 = vrot.slane %v909_v39, 1 }
 0x2fa   : > { %v911_v11 = vadd.f32 %v910_v40, %v909_v39 }
 0x2fc   : > { %915 = vmax.xlane.f32.xlu0 %v911_v11  ;;  %1322 = vst [vmem:[%s1320_s18 - $0x1] sm:$0x1] %v911_v11 }
 0x389   : > { %v916_v13 = vpop.xlane.xlu0 %915 }
 0x38a   : > { %v917_v62 = vmax.f32 %v1996_v46, %v916_v13 }
 0x38c   : > { %v2003_v17 = vrot.slane %v917_v62, %v1999_v12  ;;  %1165 = vst.msk [vmem:[#allocation2] sm:$0x1] %vm1016_vm4, %v917_v62  ;;  %v918_v44 = vsub.f32 %v1996_v46, %v917_v62 }
 0x38e   : > { %v927_v18 = vsub.f32 %v1902_v24, %v2003_v17  ;;  %v928_v15 = vsub.f32 %v1909_v52, %v2003_v17  ;;  %v929_v47 = vsub.f32 %v1913_v54, %v2003_v17  ;;  %v930_v45 = vsub.f32 %v1922_v61, %v2003_v17 }
 0x38f   : > { %v931_v20 = vsub.f32 %v1927_v4, %v2003_v17  ;;  %v932_v25 = vsub.f32 %v1934_v10, %v2003_v17  ;;  %v933_v24 = vsub.f32 %v1940_v14, %v2003_v17  ;;  %v937_v54 = vsub.f32 %v1964_v35, %v2003_v17 }
 0x390   : > { %v943_v21 = vmul.f32 1.442695, %v927_v18  ;;  %v945_v48 = vmul.f32 1.442695, %v928_v15  ;;  %v947_v26 = vmul.f32 1.442695, %v929_v47  ;;  %v934_v61 = vsub.f32 %v1945_v19, %v2003_v17 }
 0x391   : > { %v949_v16 = vmul.f32 1.442695, %v930_v45  ;;  %v951_v52 = vmul.f32 1.442695, %v931_v20  ;;  %v953_v4 = vmul.f32 1.442695, %v932_v25  ;;  %v935_v10 = vsub.f32 %v1952_v22, %v2003_v17 }
 0x392   : > { %1473 = vpow2.f32 %v943_v21  ;;  %v955_v29 = vmul.f32 1.442695, %v933_v24  ;;  %v939_v30 = vsub.f32 %v1976_v1, %v2003_v17  ;;  %v963_v14 = vmul.f32 1.442695, %v937_v54 }
 0x393   : > { %1475 = vpow2.f32 %v945_v48  ;;  %v936_v33 = vsub.f32 %v1957_v27, %v2003_v17  ;;  %v957_v55 = vmul.f32 1.442695, %v934_v61  ;;  %v959_v34 = vmul.f32 1.442695, %v935_v10 }
 0x394   : > { %1477 = vpow2.f32 %v947_v26  ;;  %v941_v35 = vsub.f32 %v1987_v59, %v2003_v17  ;;  %v967_v22 = vmul.f32 1.442695, %v939_v30  ;;  %v938_v37 = vsub.f32 %v1969_v23, %v2003_v17 }
 0x395   : > { %1479 = vpow2.f32 %v949_v16  ;;  %v961_v38 = vmul.f32 1.442695, %v936_v33  ;;  %v940_v23 = vsub.f32 %v1981_v50, %v2003_v17  ;;  %v919_v59 = vmul.f32 1.442695, %v918_v44  ;;  %v1507_v44 = vld [vmem:[%s1668_s12 + $0x8] sm:$0xff] }
 0x396   : > { %1481 = vpow2.f32 %v951_v52  ;;  %v971_v1 = vmul.f32 1.442695, %v941_v35  ;;  %v965_v51 = vmul.f32 1.442695, %v938_v37  ;;  %v942_v60 = vsub.f32 %v1991_v8, %v2003_v17  ;;  %v975_v35 = vld [vmem:[#allocation3] sm:$0x1] }
 0x397   : > { %1483 = vpow2.f32 %v953_v4  ;;  %v969_v2 = vmul.f32 1.442695, %v940_v23  ;;  %v1509_v23 = vld [vmem:[%s1668_s12 + $0x10] sm:$0xff] }
 0x398   : > { %1485 = vpow2.f32 %v955_v29  ;;  %v973_v40 = vmul.f32 1.442695, %v942_v60 }
 0x399   : > { %1487 = vpow2.f32 %v963_v14 }
 0x39a   : > { %1489 = vpow2.f32 %v957_v55 }
 0x39b   : > { %1491 = vpow2.f32 %v959_v34 }
 0x39c   : > { %v1474_v19 = vpop.eup %1473  ;;  %1493 = vpow2.f32 %v967_v22 }
 0x39d   : > { %v1476_v56 = vpop.eup %1475  ;;  %v978_v41 = vsel %vm977_vm5, %v1474_v19, 0.0  ;;  %1031 = vperm.xlu1 %1439, %v1474_v19   ;;  %1495 = vpow2.f32 %v961_v38 }
 0x39e   : > { %v1478_v27 = vpop.eup %1477  ;;  %v979_v42 = vsel %vm977_vm5, %v1476_v56, 0.0  ;;  %1036 = vperm.xlu0 %1440, %v1476_v56   ;;  %1497 = vpow2.f32 %v971_v1 }
 0x39f   : > { %v1480_v43 = vpop.eup %1479  ;;  %v980_v0 = vadd.f32 %v979_v42, %v978_v41  ;;  %v981_v36 = vsel %vm977_vm5, %v1478_v27, 0.0  ;;  %1499 = vpow2.f32 %v965_v51 }
 0x3a0   : > { %v1482_v49 = vpop.eup %1481  ;;  %v983_v57 = vsel %vm977_vm5, %v1480_v43, 0.0  ;;  %1501 = vpow2.f32 %v919_v59 }
 0x3a1   : > { %v982_v53 = vadd.f32 %v981_v36, %v980_v0  ;;  %1041 = vperm.xlu1 %1439, %v1478_v27   ;;  %v1484_v31 = vpop.eup %1483  ;;  %v985_v32 = vsel %vm977_vm5, %v1482_v49, 0.0  ;;  %1503 = vpow2.f32 %v969_v2  ;;  %v1508_v36 = vld [vmem:[%s1668_s12] sm:$0xff] }
 0x3a2   : > { %v1486_v63 = vpop.eup %1485  ;;  %v987_v7 = vsel %vm977_vm5, %v1484_v31, 0.0  ;;  %1505 = vpow2.f32 %v973_v40 }
 0x3a3   : > { %v984_v58 = vadd.f32 %v983_v57, %v982_v53  ;;  %v1488_v50 = vpop.eup %1487  ;;  %v989_v9 = vsel %vm977_vm5, %v1486_v63, 0.0 }
 0x3a4   : > { %v1490_v5 = vpop.eup %1489  ;;  %1081 = vperm.xlu0 %1440, %v1488_v50   ;;  %v997_v20 = vsel %vm977_vm5, %v1488_v50, 0.0 }
 0x3a5   : > { %v986_v3 = vadd.f32 %v985_v32, %v984_v58  ;;  %1046 = vperm.xlu1 %1439, %v1480_v43   ;;  %v1492_v39 = vpop.eup %1491  ;;  %v991_v8 = vsel %vm977_vm5, %v1490_v5, 0.0  ;;  %v1510_v58 = vld [vmem:[%s1668_s12 + $0x18] sm:$0xff] }
 0x3a6   : > { %v1494_v28 = vpop.eup %1493  ;;  %v993_v62 = vsel %vm977_vm5, %v1492_v39, 0.0 }
 0x3a7   : > { %v988_v6 = vadd.f32 %v987_v7, %v986_v3  ;;  %v1496_v46 = vpop.eup %1495  ;;  %v1001_v24 = vsel %vm977_vm5, %v1494_v28, 0.0  ;;  %v1512_v7 = vld [vmem:[%s1668_s12 + $0x28] sm:$0xff] }
 0x3a8   : > { %1091 = vperm.xlu0 %1440, %v1494_v28   ;;  %v1498_v18 = vpop.eup %1497  ;;  %v995_v15 = vsel %vm977_vm5, %v1496_v46, 0.0 }
 0x3a9   : > { %v990_v11 = vadd.f32 %v989_v9, %v988_v6  ;;  %1051 = vperm.xlu1 %1439, %v1482_v49   ;;  %v1500_v47 = vpop.eup %1499  ;;  %v1005_v10 = vsel %vm977_vm5, %v1498_v18, 0.0 }
 0x3aa   : > { %v1502_v48 = vpop.eup %1501  ;;  %v999_v25 = vsel %vm977_vm5, %v1500_v47, 0.0 }
 0x3ab   : > { %v992_v13 = vadd.f32 %v991_v8, %v990_v11  ;;  %v1504_v26 = vpop.eup %1503  ;;  %v976_v56 = vmul.f32 %v1502_v48, %v975_v35 }
 0x3ac   : > { %1101 = vperm.xlu0 %1440, %v1498_v18   ;;  %v1003_v54 = vsel %vm977_vm5, %v1504_v26, 0.0  ;;  %v1506_v61 = vpop.eup %1505 }
 0x3ad   : > { %v994_v17 = vadd.f32 %v993_v62, %v992_v13  ;;  %1056 = vperm.xlu1 %1439, %v1484_v31   ;;  %v1007_v30 = vsel %vm977_vm5, %v1506_v61, 0.0 }
 0x3af   : > { %v996_v45 = vadd.f32 %v995_v15, %v994_v17 }
 0x3b0   : > { %1021 = vperm.xlu0 %1440, %v1502_v48  }
 0x3b1   : > { %v998_v21 = vadd.f32 %v997_v20, %v996_v45  ;;  %1061 = vperm.xlu1 %1439, %v1486_v63   ;;  %v1511_v63 = vld [vmem:[%s1668_s12 + $0x20] sm:$0xff] }
 0x3b2   : > { %v1515_v20 = vld [vmem:[%s1668_s12 + $0x40] sm:$0xff] }
 0x3b3   : > { %v1000_v16 = vadd.f32 %v999_v25, %v998_v21 }
 0x3b5   : > { %v1002_v52 = vadd.f32 %v1001_v24, %v1000_v16  ;;  %1066 = vperm.xlu1 %1439, %v1490_v5  }
 0x3b7   : > { %v1004_v4 = vadd.f32 %v1003_v54, %v1002_v52  ;;  %v1516_v52 = vld [vmem:[%s1668_s12 + $0x50] sm:$0xff] }
 0x3b9   : > { %v1006_v29 = vadd.f32 %v1005_v10, %v1004_v4  ;;  %1071 = vperm.xlu1 %1439, %v1492_v39   ;;  %v1513_v39 = vld [vmem:[%s1668_s12 + $0x30] sm:$0xff] }
 0x3bb   : > { %v1008_v14 = vadd.f32 %v1007_v30, %v1006_v29 }
 0x3bd   : > { %v1009_v33 = vrot.slane %v1008_v14, 4  ;;  %1076 = vperm.xlu1 %1439, %v1496_v46   ;;  %v1514_v46 = vld [vmem:[%s1668_s12 + $0x38] sm:$0xff] }
 0x3bf   : > { %v1010_v55 = vadd.f32 %v1009_v33, %v1008_v14 }
 0x3c1   : > { %v1011_v34 = vrot.slane %v1010_v55, 2  ;;  %1086 = vperm.xlu1 %1439, %v1500_v47  }
 0x3c3   : > { %v1012_v19 = vadd.f32 %v1011_v34, %v1010_v55  ;;  %v1518_v55 = vld [vmem:[%s1668_s12 + $0x60] sm:$0xff] }
 0x3c5   : > { %v1013_v22 = vrot.slane %v1012_v19, 1  ;;  %1096 = vperm.xlu1 %1439, %v1504_v26  }
 0x3c7   : > { %v1014_v37 = vadd.f32 %v1013_v22, %v1012_v19  ;;  %v1519_v19 = vld [vmem:[%s1668_s12 + $0x58] sm:$0xff] }
 0x3c9   : > { %v1015_v38 = vadd.f32 %v1014_v37, %v976_v56  ;;  %1106 = vperm.xlu1 %1439, %v1506_v61   ;;  %v1517_v61 = vld [vmem:[%s1668_s12 + $0x48] sm:$0xff] }
 0x3cb   : > { %1017 = vst.msk [vmem:[#allocation3] sm:$0x1] %vm1016_vm4, %v1015_v38 }
 0x41c   : > { %v1032_v41 = vpop.permute.xlu1 %1031 }
 0x41d   : > { %v1037_v43 = vpop.permute.xlu0 %1036  ;;  %v1109_v49 = vmul.f32 %v1508_v36, %v1032_v41 }
 0x41e   : > { %v1110_v1 = vmul.f32 %v1507_v44, %v1037_v43 }
 0x41f   : > { %v1125_v31 = vsel %vm334_vm2, %v1109_v49, 0.0 }
 0x420   : > { %v1042_v27 = vpop.permute.xlu1 %1041  ;;  %v1126_v57 = vsel %vm334_vm2, %v1110_v1, 0.0 }
 0x421   : > { %v1111_v51 = vmul.f32 %v1509_v23, %v1042_v27  ;;  %v1127_v2 = vadd.f32 %v1126_v57, %v1125_v31 }
 0x423   : > { %v1128_v32 = vsel %vm334_vm2, %v1111_v51, 0.0  ;;  %v1082_v62 = vpop.permute.xlu0 %1081 }
 0x424   : > { %v1047_v42 = vpop.permute.xlu1 %1046  ;;  %v1129_v6 = vadd.f32 %v1128_v32, %v1127_v2  ;;  %v1119_v54 = vmul.f32 %v1516_v52, %v1082_v62  ;;  %v1174_v62 = vld [vmem:[#allocation6 + $0x1] sm:$0x1] (!%p1313_p5) }
 0x425   : > { %v1112_v59 = vmul.f32 %v1510_v58, %v1047_v42  ;;  %v1520_v42 = vld [vmem:[%s1668_s12 + $0x70] sm:$0xff] }
 0x426   : > { %v1144_v33 = vsel %vm334_vm2, %v1119_v54, 0.0 }
 0x427   : > { %v1130_v50 = vsel %vm334_vm2, %v1112_v59, 0.0  ;;  %v1092_v26 = vpop.permute.xlu0 %1091 }
 0x428   : > { %v1052_v0 = vpop.permute.xlu1 %1051  ;;  %v1131_v11 = vadd.f32 %v1130_v50, %v1129_v6  ;;  %v1121_v34 = vmul.f32 %v1518_v55, %v1092_v26 }
 0x429   : > { %v1113_v60 = vmul.f32 %v1511_v63, %v1052_v0  ;;  %v1521_v0 = vld [vmem:[%s1668_s12 + $0x68] sm:$0xff] }
 0x42a   : > { %v1148_v27 = vsel %vm334_vm2, %v1121_v34, 0.0 }
 0x42b   : > { %v1132_v9 = vsel %vm334_vm2, %v1113_v60, 0.0  ;;  %v1102_v22 = vpop.permute.xlu0 %1101 }
 0x42c   : > { %v1057_v53 = vpop.permute.xlu1 %1056  ;;  %v1133_v17 = vadd.f32 %v1132_v9, %v1131_v11  ;;  %v1123_v43 = vmul.f32 %v1520_v42, %v1102_v22  ;;  %v1170_v11 = vld [vmem:[#allocation3] sm:$0x1] (!%p1313_p5) }
 0x42d   : > { %v1114_v5 = vmul.f32 %v1512_v7, %v1057_v53  ;;  %v1522_v53 = vld [vmem:[%s1668_s12 + $0x78] sm:$0xff]  ;;  %v1018_v7 = vld [vmem:[#allocation4] sm:$0x1]  ;;  %1524 = vrcp.f32 (!%p1313_p5), %v1170_v11 }
 0x42e   : > { %v1152_v51 = vsel %vm334_vm2, %v1123_v43, 0.0 }
 0x42f   : > { %v1134_v8 = vsel %vm334_vm2, %v1114_v5, 0.0  ;;  %v1022_v60 = vpop.permute.xlu0 %1021 }
 0x430   : > { %v1062_v3 = vpop.permute.xlu1 %1061  ;;  %v1135_v15 = vadd.f32 %v1134_v8, %v1133_v17 }
 0x431   : > { %v1115_v40 = vmul.f32 %v1513_v39, %v1062_v3  ;;  %v1027_v3 = vrot.slane %v1022_v60, %v1999_v12 }
 0x433   : > { %v1136_v18 = vsel %vm334_vm2, %v1115_v40, 0.0  ;;  %v1028_v6 = vmul.f32 %v1027_v3, %v1018_v7  ;;  %v1175_v40 = vld [vmem:[#allocation2] sm:$0x1] (!%p1313_p5) }
 0x434   : > { %v1067_v28 = vpop.permute.xlu1 %1066  ;;  %v1137_v48 = vadd.f32 %v1136_v18, %v1135_v15 }
 0x435   : > { %v1116_v13 = vmul.f32 %v1514_v46, %v1067_v28  ;;  %v1601_v28 = vmov (!%p1313_p5), 0  }
 0x436   : > { %1523 = vset.pattern.permute.xlu0 (!%p1313_p5), %v1601_v28 }
 0x437   : > { %v1138_v45 = vsel %vm334_vm2, %v1116_v13, 0.0  ;;  %1178 = vperm.xlu0 (!%p1313_p5), %1523, %v1175_v40   ;;  %v1525_v8 = vpop.eup (!%p1313_p5), %1524  ;;  %v1173_v13 = vld [vmem:[#allocation6] sm:$0x1] (!%p1313_p5) }
 0x438   : > { %v1072_v47 = vpop.permute.xlu1 %1071  ;;  %v1139_v16 = vadd.f32 %v1138_v45, %v1137_v48 }
 0x439   : > { %v1117_v21 = vmul.f32 %v1515_v20, %v1072_v47 }
 0x43b   : > { %v1140_v25 = vsel %vm334_vm2, %v1117_v21, 0.0  ;;  %1193 = vperm.xlu0 (!%p1313_p5), %1523, %v1525_v8  }
 0x43c   : > { %v1077_v24 = vpop.permute.xlu1 %1076  ;;  %v1141_v10 = vadd.f32 %v1140_v25, %v1139_v16 }
 0x43d   : > { %v1118_v4 = vmul.f32 %v1517_v61, %v1077_v24 }
 0x43f   : > { %v1142_v29 = vsel %vm334_vm2, %v1118_v4, 0.0 }
 0x440   : > { %v1143_v30 = vadd.f32 %v1142_v29, %v1141_v10  ;;  %v1087_v14 = vpop.permute.xlu1 %1086 }
 0x441   : > { %v1120_v35 = vmul.f32 %v1519_v19, %v1087_v14 }
 0x442   : > { %v1145_v56 = vadd.f32 %v1144_v33, %v1143_v30 }
 0x443   : > { %v1146_v37 = vsel %vm334_vm2, %v1120_v35, 0.0 }
 0x444   : > { %v1147_v38 = vadd.f32 %v1146_v37, %v1145_v56  ;;  %v1097_v41 = vpop.permute.xlu1 %1096 }
 0x445   : > { %v1122_v44 = vmul.f32 %v1521_v0, %v1097_v41 }
 0x446   : > { %v1149_v1 = vadd.f32 %v1148_v27, %v1147_v38 }
 0x447   : > { %v1150_v36 = vsel %vm334_vm2, %v1122_v44, 0.0 }
 0x448   : > { %v1151_v49 = vadd.f32 %v1150_v36, %v1149_v1  ;;  %v1107_v23 = vpop.permute.xlu1 %1106 }
 0x449   : > { %v1124_v57 = vmul.f32 %v1522_v53, %v1107_v23 }
 0x44a   : > { %v1153_v31 = vadd.f32 %v1152_v51, %v1151_v49 }
 0x44b   : > { %v1154_v58 = vsel %vm334_vm2, %v1124_v57, 0.0  ;;  %vm1212_vm2 = vcmask (!%p1313_p5), 517120  }
 0x44c   : > { %v1155_v59 = vadd.f32 %v1154_v58, %v1153_v31 }
 0x44e   : > { %v1156_v32 = vrot.slane %v1155_v59, 4 }
 0x450   : > { %v1157_v63 = vadd.f32 %v1156_v32, %v1155_v59 }
 0x452   : > { %v1158_v2 = vrot.slane %v1157_v63, 2 }
 0x454   : > { %v1159_v50 = vadd.f32 %v1158_v2, %v1157_v63 }
 0x456   : > { %v1160_v5 = vrot.slane %v1159_v50, 1  ;;  %1169 = sbr.rel (%p1313_p5) target bundleno = 1228 (0x4cc), region = 56 }
 0x458   : > { %v1161_v9 = vadd.f32 %v1160_v5, %v1159_v50 }
 0x45a   : > { %v1162_v39 = vadd.f32 %v1161_v9, %v1028_v6 }
 0x45c   : > { %1164 = vst.msk [vmem:[#allocation4] sm:$0x1] %vm1163_vm6, %v1162_v39 }
 0x463   : > { %v1204_v20 = vld [vmem:[#allocation4] sm:$0x1] }
 0x4b6   : > { %v1179_v46 = vpop.permute.xlu0 %1178 }
 0x4b7   : > { %v1184_v17 = vrot.slane %v1179_v46, %v1999_v12 }
 0x4b9   : > { %v1185_v18 = vsub.f32 %v1173_v13, %v1184_v17  ;;  %v1186_v15 = vsub.f32 %v1174_v62, %v1184_v17 }
 0x4ba   : > { %v1194_v21 = vpop.permute.xlu0 %1193 }
 0x4bb   : > { %v1187_v47 = vmul.f32 1.442695, %v1185_v18  ;;  %v1189_v45 = vmul.f32 1.442695, %v1186_v15  ;;  %v1199_v48 = vrot.slane %v1194_v21, %v1999_v12 }
 0x4bd   : > { %1526 = vpow2.f32 %v1187_v47  ;;  %v1205_v25 = vmul.f32 %v1204_v20, %v1199_v48 }
 0x4be   : > { %1528 = vpow2.f32 %v1189_v45 }
 0x4bf   : > { %v1210_v26 = vrot.slane %v1205_v25, %v1999_v12 }
 0x4c1   : > { %1213 = vst.msk [vmem:[#allocation8] sm:$0x3] %vm1212_vm2, %v1210_v26 }
 0x4c7   : > { %v1527_v16 = vpop.eup %1526 }
 0x4c8   : > { %v1529_v24 = vpop.eup %1528  ;;  %v1200_v52 = vmul.f32 %v1527_v16, %v1199_v48 }
 0x4c9   : > { %v1201_v54 = vmul.f32 %v1529_v24, %v1199_v48 }
 0x4ca   : > { %1202 = vst [vmem:[#allocation6] sm:$0x1] %v1200_v52 }
 0x4cb   : > { %1203 = vst [vmem:[#allocation6 + $0x1] sm:$0x1] %v1201_v54 }
 0x4cc PF: > { %p1419_p6 = scmp.eq.s32.totalorder %s1660_s30, 1  ;;  %s1602_s12 = smov [#allocation6]  }
 0x4cd   : > { %s1220_s19 = sshll.u32 %s1602_s12, 4  ;;  %s1221_s19 = int_to_ptr.vmem [resolvable:$true] %s1220_s19 }
 0x4ce   : > { %s1530_s20 = scalar_lea.vmem %s1221_s19, 32  ;;  %p1537_p10 = scmp.lt.s32.totalorder %s1221_s19, %s1221_s19 }
 0x4cf   : > { %p1531_p7 = scmp.ne.s32.totalorder %s1221_s19, %s1530_s20  ;;  %p1538_p11 = scmp.lt.s32.totalorder %s1530_s20, %s1530_s20 }
 0x4d1   : > { %p1532_p8 = pnand %p1531_p7, %p1419_p6  ;;  %p1539_p12 = por %p1538_p11, %p1537_p10 }
 0x4d3   : > { %p1533_p9 = pneg %p1532_p8 }
 0x4d5   : > { %p1540_p13 = pnand %p1539_p12, %p1533_p9 }
 0x4d7   : > { %1543 = shalt.err (!%p1540_p13)
}
 0x4d8   : > { %s1544_s23 = scalar_lea.hbm %s2148_s7, 32 }
 0x4d9   : > { %p1545_p0 = scmp.ne.s32.totalorder %s2148_s7, %s1544_s23  ;;  %p1550_p3 = scmp.lt.u32.totalorder %s1544_s23, %s2148_s7 }
 0x4db   : > { %p1546_p1 = pnand %p1545_p0, %p1419_p6 }
 0x4dd   : > { %p1547_p2 = pneg %p1546_p1 }
 0x4df   : > { %p1552_p4 = pnand %p1550_p3, %p1547_p2 }
 0x4e1   : > { %1555 = shalt.err (!%p1552_p4)
}
 0x4e2   : > { %s1603_s28 = smov 16   ;;  %s1604_s6 = smov 1  }
 0x4e3   : > { %1412 = dma.vmem_to_hbm [thread:$0]  (%p1419_p6), %s1221_s19, 32, %s2148_s7, [#allocation7], %s1603_s28, %s1603_s28, %s1604_s6  }
 0x4e4   : > { %s1605_s11 = smov [#allocation8]  }
 0x4e5   : > { %s1234_s13 = sshll.u32 %s1605_s11, 4  ;;  %s1235_s13 = int_to_ptr.vmem [resolvable:$true] %s1234_s13 }
 0x4e6   : > { %s1556_s14 = scalar_lea.vmem %s1235_s13, 32  ;;  %p1563_p9 = scmp.lt.s32.totalorder %s1235_s13, %s1235_s13 }
 0x4e7   : > { %p1557_p5 = scmp.ne.s32.totalorder %s1235_s13, %s1556_s14  ;;  %p1564_p10 = scmp.lt.s32.totalorder %s1556_s14, %s1556_s14 }
 0x4e9   : > { %p1558_p7 = pnand %p1557_p5, %p1419_p6  ;;  %p1565_p11 = por %p1564_p10, %p1563_p9 }
 0x4eb   : > { %p1559_p8 = pneg %p1558_p7 }
 0x4ed   : > { %p1566_p12 = pnand %p1565_p11, %p1559_p8 }
 0x4ef   : > { %1569 = shalt.err (!%p1566_p12)
}
 0x4f0   : > { %s1570_s17 = scalar_lea.hbm %s2149_s8, 32 }
 0x4f1   : > { %p1571_p13 = scmp.ne.s32.totalorder %s2149_s8, %s1570_s17  ;;  %p1576_p2 = scmp.lt.u32.totalorder %s1570_s17, %s2149_s8 }
 0x4f3   : > { %p1572_p0 = pnand %p1571_p13, %p1419_p6 }
 0x4f5   : > { %p1573_p1 = pneg %p1572_p0 }
 0x4f7   : > { %p1578_p3 = pnand %p1576_p2, %p1573_p1 }
 0x4f9   : > { %1581 = shalt.err (!%p1578_p3)
}
 0x4fa   : > { %1414 = dma.vmem_to_hbm [thread:$0]  (%p1419_p6), %s1235_s13, 32, %s2149_s8, [#allocation9]  }
 0x4fb   : > { %1587 = dma.done.wait (%p1419_p6), [#allocation7], 32  }
 0x4fc   : > { %1589 = vsyncadd (%p1419_p6), [#allocation7], 4294967264 }
 0x4fd   : > { %1591 = dma.done.wait (%p1419_p6), [#allocation9], 32  }
 0x4fe   : > { %1593 = vsyncadd (%p1419_p6), [#allocation9], 4294967264 }
 0x4ff PF: > { %s22_s29 = sadd.s32 1, %s1596_s29  }
 0x500   : > { %p19_p4 = scmp.ge.s32.totalorder %s22_s29, 4  }
 0x502   :  { %21 = sbr.rel (!%p19_p4) target bundleno = 4 (0x4), region = 92 }
 0x509   :  { %1251 = vsyncpa [#allocation7], 1 }
 0x50a   :  { %1253 = vsyncpa [#allocation7 + $0x1], 1 }
 0x50b   :  { %1254 = vsyncpa [#allocation9], 1 }

</bundles_post_ra>
